<compile_context>
chip_gen: v7x
topology: tpu7x:2x2x1
jax: 0.10.0
libtpu: 0.0.40
codegen_flags: <defaults>
</compile_context>

<pallas_src>
import functools

import jax
import jax.numpy as jnp
from jax.experimental import pallas as pl
from jax.experimental.pallas import tpu as pltpu

LANE = 128       # channel dims zero-padded to multiples of this (lane-dense)
SUBLANE = 8      # time offsets / tiles aligned to this


def _round_up(x, m):
    return (x + m - 1) // m * m


def _single_buffered_spec(arr):
    """Grid-invariant (resident) weight/bias spec; request single buffering."""
    idx = (0,) * arr.ndim
    try:
        if hasattr(pl, "Buffered"):
            return pl.BlockSpec(arr.shape, lambda b, t: idx,
                                pipeline_mode=pl.Buffered(1))
    except TypeError:
        pass
    return pl.BlockSpec(arr.shape, lambda b, t: idx)


# ---------------------------------------------------------------------------
# Fused TemporalBlock kernel: one grid step = one (batch, time-tile).
# ---------------------------------------------------------------------------
def _make_block_kernel(K, dilation, TL, halo_pad, Cpi, has_ds, conv_mode,
                       compute_dtype):
    halo = (K - 1) * dilation          # receptive-field halo of one conv
    lead = halo_pad - 2 * halo         # sublane-alignment slack (>= 0)
    Lh = TL + halo                     # rows of h needed to emit TL outputs
    W = TL + halo_pad                  # rows of the x window per tile

    def kernel(x_hbm, w1_ref, b1_ref, w2_ref, b2_ref, *rest):
        if has_ds:
            wds_ref, bds_ref, o_ref, xbuf, hbuf, sem = rest
        else:
            o_ref, xbuf, hbuf, sem = rest

        b = pl.program_id(0)
        t = pl.program_id(1)
        nt = pl.num_programs(1)
        t0 = t * TL
        slot = t % 2

        # -------- manual, double-buffered x-window DMA ------------------------
        def prime_copy():
            # tile 0: only TL real rows; the causal halo rows are zeroed in VMEM
            if halo_pad > 0:
                dst = xbuf.at[0, pl.ds(halo_pad, TL), :]
            else:
                dst = xbuf.at[0]
            return pltpu.make_async_copy(x_hbm.at[b, pl.ds(0, TL), :], dst,
                                         sem.at[0])

        def window_copy(tile_idx, s):
            # tile >= 1: full window [tile*TL - halo_pad, tile*TL + TL)
            start = pl.multiple_of(tile_idx * TL - halo_pad, SUBLANE)
            return pltpu.make_async_copy(
                x_hbm.at[b, pl.ds(start, W), :], xbuf.at[s], sem.at[s])

        @pl.when(t == 0)
        def _start_prime():
            if halo_pad > 0:
                xbuf[0, 0:halo_pad, :] = jnp.zeros((halo_pad, Cpi), xbuf.dtype)
            prime_copy().start()

        @pl.when(t + 1 < nt)
        def _start_prefetch():                       # prefetch tile t+1
            window_copy(t + 1, 1 - slot).start()

        @pl.when(t == 0)
        def _wait_prime():
            prime_copy().wait()

        @pl.when(t > 0)
        def _wait_window():                          # started at step t-1
            window_copy(t, slot).wait()

        # -------- conv1 (+bias, ReLU) -----------------------------------------
        def tap_x(j):                                # ref slice, static offsets
            a = lead + j * dilation
            return xbuf[slot, a:a + Lh, :]

        if conv_mode == "stacked":
            xs = jnp.concatenate([tap_x(j) for j in range(K)], axis=-1)
            h = jnp.dot(xs, w1_ref[...], preferred_element_type=jnp.float32)
        else:  # "accum": K accumulated contractions, no concat temporaries
            h = jnp.dot(tap_x(0), w1_ref[0], preferred_element_type=jnp.float32)
            for j in range(1, K):
                h = h + jnp.dot(tap_x(j), w1_ref[j],
                                preferred_element_type=jnp.float32)
        h = jnp.maximum(h + b1_ref[...], 0.0)        # f32 bias + ReLU

        if halo > 0:
            # conv2's causal zero padding of h: rows at negative times must be 0.
            # (Only non-trivial at t == 0; kept branch-free — cheap VPU filler.)
            row_t = t0 - halo + jax.lax.broadcasted_iota(jnp.int32, (Lh, 1), 0)
            h = jnp.where(row_t >= 0, h, 0.0)

        hbuf[...] = h.astype(compute_dtype)          # stage h once; taps read refs

        # -------- conv2 (+bias, ReLU) -----------------------------------------
        def tap_h(j):
            a = j * dilation
            return hbuf[a:a + TL, :]

        if conv_mode == "stacked":
            hs = jnp.concatenate([tap_h(j) for j in range(K)], axis=-1)
            out = jnp.dot(hs, w2_ref[...], preferred_element_type=jnp.float32)
        else:
            out = jnp.dot(tap_h(0), w2_ref[0], preferred_element_type=jnp.float32)
            for j in range(1, K):
                out = out + jnp.dot(tap_h(j), w2_ref[j],
                                    preferred_element_type=jnp.float32)
        out = jnp.maximum(out + b2_ref[...], 0.0)

        # -------- residual (identity or 1x1 conv) + final ReLU ----------------
        x_res = xbuf[slot, halo_pad:halo_pad + TL, :]
        if has_ds:
            res = jnp.dot(x_res, wds_ref[...],
                          preferred_element_type=jnp.float32) + bds_ref[...]
        else:
            res = x_res.astype(jnp.float32)
        o_ref[0] = jnp.maximum(out + res, 0.0).astype(o_ref.dtype)

    return kernel


def temporal_block(x, p, *, dilation, kernel_size, conv_mode, seq_tile,
                   compute_dtype, vmem_limit_bytes=None):
    """x: (B, L, Cpi) lane-padded activations (compute_dtype). Returns (B, L, Cpo)."""
    B, L, Cpi = x.shape
    K = kernel_size
    has_ds = p["w_ds"] is not None
    Cpo = p["b1"].shape[-1]

    halo = (K - 1) * dilation
    halo_pad = _round_up(2 * halo, SUBLANE)
    # Time tile: sublane-aligned, >= halo_pad; choose seq_tile >> halo_pad for deep
    # layers to amortize the halo re-fetch.
    TL = _round_up(min(max(seq_tile, SUBLANE), _round_up(L, SUBLANE)), SUBLANE)
    TL = max(TL, halo_pad, SUBLANE)
    Lpad = _round_up(L, TL)                 # never collapse to a single giant tile
    nT = Lpad // TL
    if Lpad != L:
        x = jnp.pad(x, ((0, 0), (0, Lpad - L), (0, 0)))

    in_specs = [
        pl.BlockSpec(memory_space=pl.ANY),                 # x stays in HBM
        _single_buffered_spec(p["w1"]), _single_buffered_spec(p["b1"]),
        _single_buffered_spec(p["w2"]), _single_buffered_spec(p["b2"]),
    ]
    args = [x, p["w1"], p["b1"], p["w2"], p["b2"]]
    if has_ds:
        in_specs += [_single_buffered_spec(p["w_ds"]),
                     _single_buffered_spec(p["b_ds"])]
        args += [p["w_ds"], p["b_ds"]]

    kernel = _make_block_kernel(K, dilation, TL, halo_pad, Cpi, has_ds,
                                conv_mode, compute_dtype)

    itemsize = jnp.dtype(compute_dtype).itemsize
    if vmem_limit_bytes is None:
        est = (2 * (TL + halo_pad) * Cpi + (TL + halo) * Cpo) * itemsize  # scratch
        est += 2 * TL * Cpo * itemsize                                    # out blocks
        est += sum(int(a.size) * a.dtype.itemsize for a in args[1:])      # weights
        if conv_mode == "stacked":
            est += ((TL + halo) * K * Cpi + TL * K * Cpo) * itemsize      # temporaries
        vmem_limit_bytes = min(max(2 * est, 32 * 1024 * 1024), 64 * 1024 * 1024)

    out = pl.pallas_call(
        kernel,
        out_shape=jax.ShapeDtypeStruct((B, Lpad, Cpo), compute_dtype),
        grid=(B, nT),
        in_specs=in_specs,
        out_specs=pl.BlockSpec((1, TL, Cpo), lambda b, t: (b, t, 0)),
        scratch_shapes=[
            pltpu.VMEM((2, TL + halo_pad, Cpi), compute_dtype),  # 2-slot x window
            pltpu.VMEM((TL + halo, Cpo), compute_dtype),         # staged h
            pltpu.SemaphoreType.DMA((2,)),
        ],
        compiler_params=pltpu.CompilerParams(
            # b "parallel" (megacore shards on batch); t "arbitrary" so the
            # cross-step DMA prefetch is sequentially well-defined per core.
            dimension_semantics=("parallel", "arbitrary"),
            vmem_limit_bytes=int(vmem_limit_bytes),
        ),
    )(*args)
    if Lpad != L:
        out = out[:, :L, :]
    return out


# ---------------------------------------------------------------------------
# Parameter packing (done ONCE, outside the per-step forward) and TCN glue.
# ---------------------------------------------------------------------------
def pack_tcn_params(raw_params, *, kernel_size, compute_dtype=jnp.bfloat16,
                    conv_mode="stacked"):
    assert conv_mode in ("stacked", "accum")
    K = kernel_size
    packed = []
    for p in raw_params:
        cin, cout = p["w1"].shape[1], p["w1"].shape[2]
        Cpi, Cpo = _round_up(cin, LANE), _round_up(cout, LANE)
        w1 = jnp.pad(p["w1"], ((0, 0), (0, Cpi - cin), (0, Cpo - cout)))
        w2 = jnp.pad(p["w2"], ((0, 0), (0, Cpo - cout), (0, Cpo - cout)))
        w1 = w1.astype(compute_dtype)
        w2 = w2.astype(compute_dtype)
        if conv_mode == "stacked":
            w1 = w1.reshape(K * Cpi, Cpo)
            w2 = w2.reshape(K * Cpo, Cpo)
        entry = {
            "w1": w1,
            "b1": jnp.pad(p["b1"], (0, Cpo - cout)).reshape(1, Cpo).astype(jnp.float32),
            "w2": w2,
            "b2": jnp.pad(p["b2"], (0, Cpo - cout)).reshape(1, Cpo).astype(jnp.float32),
        }
        if p["w_ds"] is not None:
            entry["w_ds"] = jnp.pad(p["w_ds"][0],
                                    ((0, Cpi - cin), (0, Cpo - cout))).astype(compute_dtype)
            entry["b_ds"] = jnp.pad(p["b_ds"],
                                    (0, Cpo - cout)).reshape(1, Cpo).astype(jnp.float32)
        else:
            entry["w_ds"] = None
            entry["b_ds"] = None
        packed.append(entry)
    return packed


def tcn_forward(x_ncl, packed_params, *, kernel_size, out_channels,
                conv_mode="stacked", seq_tile=1024,
                compute_dtype=jnp.bfloat16, vmem_limit_bytes=None):
    B, C, L = x_ncl.shape
    Cp = _round_up(C, LANE)
    x = jnp.transpose(x_ncl, (0, 2, 1)).astype(compute_dtype)   # (B, L, C)
    x = jnp.pad(x, ((0, 0), (0, 0), (0, Cp - C)))               # lane-dense channels
    for i, p in enumerate(packed_params):
        x = temporal_block(x, p, dilation=2 ** i, kernel_size=kernel_size,
                           conv_mode=conv_mode, seq_tile=seq_tile,
                           compute_dtype=compute_dtype,
                           vmem_limit_bytes=vmem_limit_bytes)
    x = x[..., :out_channels]                                   # drop lane padding
    return jnp.transpose(x, (0, 2, 1)).astype(x_ncl.dtype)      # back to NCL


def init_tcn_params(key, num_inputs, num_channels, kernel_size):
    params = []
    for i, cout in enumerate(num_channels):
        cin = num_inputs if i == 0 else num_channels[i - 1]
        key, k1, k2, k3, k4, k5, k6 = jax.random.split(key, 7)
        p = {
            "w1": 0.1 * jax.random.normal(k1, (kernel_size, cin, cout), jnp.float32),
            "b1": 0.1 * jax.random.normal(k2, (cout,), jnp.float32),
            "w2": 0.1 * jax.random.normal(k3, (kernel_size, cout, cout), jnp.float32),
            "b2": 0.1 * jax.random.normal(k4, (cout,), jnp.float32),
        }
        if cin != cout:     # downsample 1x1 conv only when channel counts differ
            p["w_ds"] = 0.1 * jax.random.normal(k5, (1, cin, cout), jnp.float32)
            p["b_ds"] = 0.1 * jax.random.normal(k6, (cout,), jnp.float32)
        else:
            p["w_ds"] = None
            p["b_ds"] = None
        params.append(p)
    return params


# ---------------------------------------------------------------------------
# Pure-JAX reference (for the correctness check in the demo).
# ---------------------------------------------------------------------------
def _causal_conv_ref(x, w, b, dilation):
    K, L = w.shape[0], x.shape[-1]
    xp = jnp.pad(x, ((0, 0), (0, 0), ((K - 1) * dilation, 0)))
    out = 0.0
    for j in range(K):
        out = out + jnp.einsum("bcl,co->bol", xp[:, :, j * dilation: j * dilation + L],
                               w[j], precision=jax.lax.Precision.HIGHEST)
    return out + b[None, :, None]


def tcn_reference(x_ncl, raw_params, *, kernel_size):
    x = x_ncl.astype(jnp.float32)
    for i, p in enumerate(raw_params):
        d = 2 ** i
        h = jax.nn.relu(_causal_conv_ref(x, p["w1"], p["b1"], d))
        out = jax.nn.relu(_causal_conv_ref(h, p["w2"], p["b2"], d))
        if p["w_ds"] is None:
            res = x
        else:
            res = jnp.einsum("bcl,co->bol", x, p["w_ds"][0],
                             precision=jax.lax.Precision.HIGHEST) + p["b_ds"][None, :, None]
        x = jax.nn.relu(out + res)
    return x


if __name__ == "__main__":
    # Small shapes consistent with the module: batch=2, num_inputs=4, seq_len=16,
    # num_channels=[8, 8], kernel_size=3, dropout = identity (inference).
    B, C_IN, L = 2, 4, 16
    NUM_CHANNELS = [8, 8]
    KERNEL_SIZE = 3

    key = jax.random.PRNGKey(0)
    key, kx = jax.random.split(key)
    x = jax.random.normal(kx, (B, C_IN, L), jnp.float32)        # NCL, like PyTorch
    raw = init_tcn_params(key, C_IN, NUM_CHANNELS, KERNEL_SIZE)

    # ---- f32 / stacked-tap run: checked against the pure-JAX reference -------
    # seq_tile=8 exercises the multi-tile halo + double-buffered-DMA path at L=16.
    packed_f32 = pack_tcn_params(raw, kernel_size=KERNEL_SIZE,
                                 compute_dtype=jnp.float32, conv_mode="stacked")
    fwd_f32 = jax.jit(functools.partial(
        tcn_forward, kernel_size=KERNEL_SIZE, out_channels=NUM_CHANNELS[-1],
        conv_mode="stacked", seq_tile=8, compute_dtype=jnp.float32))
    out_f32 = jax.block_until_ready(fwd_f32(x, packed_f32))
    assert out_f32.shape == (B, NUM_CHANNELS[-1], L), out_f32.shape
    ref = jax.block_until_ready(tcn_reference(x, raw, kernel_size=KERNEL_SIZE))
    err = float(jnp.max(jnp.abs(out_f32.astype(jnp.float32) - ref)))
    assert err < 5e-2, f"kernel/reference mismatch: max abs err = {err}"

    # ---- bf16 / accumulated-tap run (the fast default path) ------------------
    packed_bf16 = pack_tcn_params(raw, kernel_size=KERNEL_SIZE,
                                  compute_dtype=jnp.bfloat16, conv_mode="accum")
    fwd_bf16 = jax.jit(functools.partial(
        tcn_forward, kernel_size=KERNEL_SIZE, out_channels=NUM_CHANNELS[-1],
        conv_mode="accum", seq_tile=8, compute_dtype=jnp.bfloat16))
    out_bf16 = jax.block_until_ready(fwd_bf16(x, packed_bf16))
    assert out_bf16.shape == (B, NUM_CHANNELS[-1], L), out_bf16.shape
    assert bool(jnp.all(jnp.isfinite(out_bf16)))
    err_bf16 = float(jnp.max(jnp.abs(out_bf16.astype(jnp.float32) - ref)))
    assert err_bf16 < 0.25, f"bf16 path diverged too far: {err_bf16}"

    print("KERNEL_OK")
</pallas_src>

<mosaic_0001>
module attributes {stable_mosaic.version = 11 : i64} {
  func.func @kernel(%arg0: i32, %arg1: i32, %arg2: memref<2x16x128xf32, #tpu.memory_space<any>>, %arg3: memref<384x128xf32, #tpu.memory_space<vmem>>, %arg4: memref<1x128xf32, #tpu.memory_space<vmem>>, %arg5: memref<384x128xf32, #tpu.memory_space<vmem>>, %arg6: memref<1x128xf32, #tpu.memory_space<vmem>>, %arg7: memref<128x128xf32, #tpu.memory_space<vmem>>, %arg8: memref<1x128xf32, #tpu.memory_space<vmem>>, %arg9: memref<1x8x128xf32, #tpu.memory_space<vmem>>, %arg10: memref<2x16x128xf32, #tpu.memory_space<vmem>>, %arg11: memref<10x128xf32, #tpu.memory_space<vmem>>, %arg12: memref<2x!tpu.dma_semaphore, #tpu.memory_space<semaphore_mem>>) attributes {dimension_semantics = [#tpu.dimension_semantics<parallel>, #tpu.dimension_semantics<arbitrary>], iteration_bounds = array<i64: 2, 2>, scalar_prefetch = 0 : i64, scratch_operands = 3 : i64, tpu.core_type = #tpu.core_type<tc>, window_params = [{}, {pipeline_mode = #tpu.pipeline_mode<synchronous>, transform_indices = @transform_1, window_bounds = array<i64: 384, 128>}, {pipeline_mode = #tpu.pipeline_mode<synchronous>, transform_indices = @transform_2, window_bounds = array<i64: 1, 128>}, {pipeline_mode = #tpu.pipeline_mode<synchronous>, transform_indices = @transform_3, window_bounds = array<i64: 384, 128>}, {pipeline_mode = #tpu.pipeline_mode<synchronous>, transform_indices = @transform_4, window_bounds = array<i64: 1, 128>}, {pipeline_mode = #tpu.pipeline_mode<synchronous>, transform_indices = @transform_5, window_bounds = array<i64: 128, 128>}, {pipeline_mode = #tpu.pipeline_mode<synchronous>, transform_indices = @transform_6, window_bounds = array<i64: 1, 128>}, {transform_indices = @transform_7, window_bounds = array<i64: 1, 8, 128>}]} {
    %c8_i32 = arith.constant 8 : i32
    %0 = arith.muli %arg1, %c8_i32 : i32
    %c2_i32 = arith.constant 2 : i32
    %c0_i32 = arith.constant 0 : i32
    %1 = arith.cmpi eq, %c2_i32, %c0_i32 : i32
    %c1_i32 = arith.constant 1 : i32
    %2 = arith.select %1, %c1_i32, %c2_i32 : i32
    %3 = arith.remsi %arg1, %2 : i32
    %c0_i32_0 = arith.constant 0 : i32
    %4 = arith.cmpi ne, %3, %c0_i32_0 : i32
    %c0_i32_1 = arith.constant 0 : i32
    %5 = arith.cmpi slt, %3, %c0_i32_1 : i32
    %c0_i32_2 = arith.constant 0 : i32
    %6 = arith.cmpi slt, %2, %c0_i32_2 : i32
    %7 = arith.xori %5, %6 : i1
    %8 = arith.andi %7, %4 : i1
    %9 = arith.addi %3, %2 : i32
    %10 = arith.select %8, %9, %3 : i32
    %c0_i32_3 = arith.constant 0 : i32
    %11 = arith.cmpi eq, %arg1, %c0_i32_3 : i32
    %12 = arith.extui %11 : i1 to i32
    %c0_i32_4 = arith.constant 0 : i32
    %13 = arith.cmpi ne, %12, %c0_i32_4 : i32
    scf.if %13 {
      %cst_44 = arith.constant 0.000000e+00 : f32
      %77 = vector.broadcast %cst_44 : f32 to vector<8x128xf32>
      %c0_45 = arith.constant 0 : index
      %c0_46 = arith.constant 0 : index
      %c0_47 = arith.constant 0 : index
      %78 = vector.load %arg10[%c0_45, %c0_46, %c0_47] : memref<2x16x128xf32, #tpu.memory_space<vmem>>, vector<1x8x128xf32>
      %79 = vector.shape_cast %78 : vector<1x8x128xf32> to vector<8x128xf32>
      %80 = vector.shape_cast %77 : vector<8x128xf32> to vector<1x8x128xf32>
      tpu.vector_store %arg10[%c0_45, %c0_46, %c0_47], %80 {strides = array<i32>} : memref<2x16x128xf32, #tpu.memory_space<vmem>>, vector<1x8x128xf32>,
      %c0_i32_48 = arith.constant 0 : i32
      %c0_i32_49 = arith.constant 0 : i32
      %c0_i32_50 = arith.constant 0 : i32
      %c0_i32_51 = arith.constant 0 : i32
      %81 = tpu.memref_slice %arg2[%arg0, %c0_i32_50, %c0_i32_51] : memref<2x16x128xf32, #tpu.memory_space<any>> -> memref<1x8x128xf32, #tpu.memory_space<any>>
      %82 = tpu.memref_squeeze %81 : memref<1x8x128xf32, #tpu.memory_space<any>> -> memref<8x128xf32, #tpu.memory_space<any>>
      %c8_i32_52 = arith.constant 8 : i32
      %c0_i32_53 = arith.constant 0 : i32
      %83 = tpu.memref_slice %arg10[%c0_i32_48, %c8_i32_52, %c0_i32_53] : memref<2x16x128xf32, #tpu.memory_space<vmem>> -> memref<1x8x128xf32, #tpu.memory_space<vmem>>
      %84 = tpu.memref_squeeze %83 : memref<1x8x128xf32, #tpu.memory_space<vmem>> -> memref<8x128xf32, #tpu.memory_space<vmem>>
      %85 = tpu.memref_slice %arg12[%c0_i32_49] : memref<2x!tpu.dma_semaphore, #tpu.memory_space<semaphore_mem>> -> memref<1x!tpu.dma_semaphore, #tpu.memory_space<semaphore_mem>>
      %86 = tpu.memref_squeeze %85 : memref<1x!tpu.dma_semaphore, #tpu.memory_space<semaphore_mem>> -> memref<!tpu.dma_semaphore, #tpu.memory_space<semaphore_mem>>
      tpu.enqueue_dma source(%82 : memref<8x128xf32, #tpu.memory_space<any>>) target(%84 : memref<8x128xf32, #tpu.memory_space<vmem>>) target_semaphore(%86 : memref<!tpu.dma_semaphore, #tpu.memory_space<semaphore_mem>>)
    } else {
    }
    %c1_i32_5 = arith.constant 1 : i32
    %14 = arith.addi %arg1, %c1_i32_5 : i32
    %c2_i32_6 = arith.constant 2 : i32
    %15 = arith.cmpi slt, %14, %c2_i32_6 : i32
    %16 = arith.extui %15 : i1 to i32
    %c0_i32_7 = arith.constant 0 : i32
    %17 = arith.cmpi ne, %16, %c0_i32_7 : i32
    scf.if %17 {
      %c1_i32_44 = arith.constant 1 : i32
      %77 = arith.addi %arg1, %c1_i32_44 : i32
      %c1_i32_45 = arith.constant 1 : i32
      %78 = arith.subi %c1_i32_45, %10 : i32
      %c8_i32_46 = arith.constant 8 : i32
      %79 = arith.muli %77, %c8_i32_46 : i32
      %c8_i32_47 = arith.constant 8 : i32
      %80 = arith.subi %79, %c8_i32_47 : i32
      %81 = tpu.assume_multiple %80, 8 : i32
      %c0_i32_48 = arith.constant 0 : i32
      %82 = tpu.memref_slice %arg2[%arg0, %81, %c0_i32_48] : memref<2x16x128xf32, #tpu.memory_space<any>> -> memref<1x16x128xf32, #tpu.memory_space<any>>
      %83 = tpu.memref_squeeze %82 : memref<1x16x128xf32, #tpu.memory_space<any>> -> memref<16x128xf32, #tpu.memory_space<any>>
      %c0_i32_49 = arith.constant 0 : i32
      %c0_i32_50 = arith.constant 0 : i32
      %84 = tpu.memref_slice %arg10[%78, %c0_i32_49, %c0_i32_50] : memref<2x16x128xf32, #tpu.memory_space<vmem>> -> memref<1x16x128xf32, #tpu.memory_space<vmem>>
      %85 = tpu.memref_squeeze %84 : memref<1x16x128xf32, #tpu.memory_space<vmem>> -> memref<16x128xf32, #tpu.memory_space<vmem>>
      %86 = tpu.memref_slice %arg12[%78] : memref<2x!tpu.dma_semaphore, #tpu.memory_space<semaphore_mem>> -> memref<1x!tpu.dma_semaphore, #tpu.memory_space<semaphore_mem>>
      %87 = tpu.memref_squeeze %86 : memref<1x!tpu.dma_semaphore, #tpu.memory_space<semaphore_mem>> -> memref<!tpu.dma_semaphore, #tpu.memory_space<semaphore_mem>>
      tpu.enqueue_dma source(%83 : memref<16x128xf32, #tpu.memory_space<any>>) target(%85 : memref<16x128xf32, #tpu.memory_space<vmem>>) target_semaphore(%87 : memref<!tpu.dma_semaphore, #tpu.memory_space<semaphore_mem>>)
    } else {
    }
    %c0_i32_8 = arith.constant 0 : i32
    %18 = arith.cmpi eq, %arg1, %c0_i32_8 : i32
    %19 = arith.extui %18 : i1 to i32
    %c0_i32_9 = arith.constant 0 : i32
    %20 = arith.cmpi ne, %19, %c0_i32_9 : i32
    scf.if %20 {
      %c0_i32_44 = arith.constant 0 : i32
      %c0_i32_45 = arith.constant 0 : i32
      %c0_i32_46 = arith.constant 0 : i32
      %c0_i32_47 = arith.constant 0 : i32
      %77 = tpu.memref_slice %arg2[%arg0, %c0_i32_46, %c0_i32_47] : memref<2x16x128xf32, #tpu.memory_space<any>> -> memref<1x8x128xf32, #tpu.memory_space<any>>
      %78 = tpu.memref_squeeze %77 : memref<1x8x128xf32, #tpu.memory_space<any>> -> memref<8x128xf32, #tpu.memory_space<any>>
      %c8_i32_48 = arith.constant 8 : i32
      %c0_i32_49 = arith.constant 0 : i32
      %79 = tpu.memref_slice %arg10[%c0_i32_44, %c8_i32_48, %c0_i32_49] : memref<2x16x128xf32, #tpu.memory_space<vmem>> -> memref<1x8x128xf32, #tpu.memory_space<vmem>>
      %80 = tpu.memref_squeeze %79 : memref<1x8x128xf32, #tpu.memory_space<vmem>> -> memref<8x128xf32, #tpu.memory_space<vmem>>
      %81 = tpu.memref_slice %arg12[%c0_i32_45] : memref<2x!tpu.dma_semaphore, #tpu.memory_space<semaphore_mem>> -> memref<1x!tpu.dma_semaphore, #tpu.memory_space<semaphore_mem>>
      %82 = tpu.memref_squeeze %81 : memref<1x!tpu.dma_semaphore, #tpu.memory_space<semaphore_mem>> -> memref<!tpu.dma_semaphore, #tpu.memory_space<semaphore_mem>>
      tpu.wait_dma2 semaphore(%82 : memref<!tpu.dma_semaphore, #tpu.memory_space<semaphore_mem>>) src(%78 : memref<8x128xf32, #tpu.memory_space<any>>) dst(%80 : memref<8x128xf32, #tpu.memory_space<vmem>>)
    } else {
    }
    %c0_i32_10 = arith.constant 0 : i32
    %21 = arith.cmpi sgt, %arg1, %c0_i32_10 : i32
    %22 = arith.extui %21 : i1 to i32
    %c0_i32_11 = arith.constant 0 : i32
    %23 = arith.cmpi ne, %22, %c0_i32_11 : i32
    scf.if %23 {
      %c8_i32_44 = arith.constant 8 : i32
      %77 = arith.muli %arg1, %c8_i32_44 : i32
      %c8_i32_45 = arith.constant 8 : i32
      %78 = arith.subi %77, %c8_i32_45 : i32
      %79 = tpu.assume_multiple %78, 8 : i32
      %c0_i32_46 = arith.constant 0 : i32
      %80 = tpu.memref_slice %arg2[%arg0, %79, %c0_i32_46] : memref<2x16x128xf32, #tpu.memory_space<any>> -> memref<1x16x128xf32, #tpu.memory_space<any>>
      %81 = tpu.memref_squeeze %80 : memref<1x16x128xf32, #tpu.memory_space<any>> -> memref<16x128xf32, #tpu.memory_space<any>>
      %c0_i32_47 = arith.constant 0 : i32
      %c0_i32_48 = arith.constant 0 : i32
      %82 = tpu.memref_slice %arg10[%10, %c0_i32_47, %c0_i32_48] : memref<2x16x128xf32, #tpu.memory_space<vmem>> -> memref<1x16x128xf32, #tpu.memory_space<vmem>>
      %83 = tpu.memref_squeeze %82 : memref<1x16x128xf32, #tpu.memory_space<vmem>> -> memref<16x128xf32, #tpu.memory_space<vmem>>
      %84 = tpu.memref_slice %arg12[%10] : memref<2x!tpu.dma_semaphore, #tpu.memory_space<semaphore_mem>> -> memref<1x!tpu.dma_semaphore, #tpu.memory_space<semaphore_mem>>
      %85 = tpu.memref_squeeze %84 : memref<1x!tpu.dma_semaphore, #tpu.memory_space<semaphore_mem>> -> memref<!tpu.dma_semaphore, #tpu.memory_space<semaphore_mem>>
      tpu.wait_dma2 semaphore(%85 : memref<!tpu.dma_semaphore, #tpu.memory_space<semaphore_mem>>) src(%81 : memref<16x128xf32, #tpu.memory_space<any>>) dst(%83 : memref<16x128xf32, #tpu.memory_space<vmem>>)
    } else {
    }
    %24 = arith.index_cast %10 : i32 to index
    %c4 = arith.constant 4 : index
    %c0 = arith.constant 0 : index
    %25 = vector.load %arg10[%24, %c4, %c0] : memref<2x16x128xf32, #tpu.memory_space<vmem>>, vector<1x10x128xf32>
    %26 = vector.shape_cast %25 : vector<1x10x128xf32> to vector<10x128xf32>
    %27 = arith.index_cast %10 : i32 to index
    %c5 = arith.constant 5 : index
    %c0_12 = arith.constant 0 : index
    %28 = vector.load %arg10[%27, %c5, %c0_12] : memref<2x16x128xf32, #tpu.memory_space<vmem>>, vector<1x10x128xf32>
    %29 = vector.shape_cast %28 : vector<1x10x128xf32> to vector<10x128xf32>
    %30 = arith.index_cast %10 : i32 to index
    %c6 = arith.constant 6 : index
    %c0_13 = arith.constant 0 : index
    %31 = vector.load %arg10[%30, %c6, %c0_13] : memref<2x16x128xf32, #tpu.memory_space<vmem>>, vector<1x10x128xf32>
    %32 = vector.shape_cast %31 : vector<1x10x128xf32> to vector<10x128xf32>
    %33 = tpu.concatenate %26, %29, %32 in 1 : vector<10x128xf32>, vector<10x128xf32>, vector<10x128xf32> -> vector<10x384xf32>
    %c0_14 = arith.constant 0 : index
    %c0_15 = arith.constant 0 : index
    %34 = vector.load %arg3[%c0_14, %c0_15] : memref<384x128xf32, #tpu.memory_space<vmem>>, vector<384x128xf32>
    %cst = arith.constant dense<0.000000e+00> : vector<10x128xf32>
    %35 = tpu.matmul %33, %34, %cst {dimension_numbers = #tpu.dot_dimension_numbers<[1], [0], [0], [1], [0, 0, 1, 1], [], []>} : vector<10x384xf32>, vector<384x128xf32>, vector<10x128xf32> -> vector<10x128xf32>
    %c0_16 = arith.constant 0 : index
    %c0_17 = arith.constant 0 : index
    %36 = vector.load %arg4[%c0_16, %c0_17] : memref<1x128xf32, #tpu.memory_space<vmem>>, vector<1x128xf32>
    %37 = vector.broadcast %36 : vector<1x128xf32> to vector<10x128xf32>
    %38 = arith.addf %35, %37 : vector<10x128xf32>
    %cst_18 = arith.constant 0.000000e+00 : f32
    %39 = vector.broadcast %cst_18 : f32 to vector<10x128xf32>
    %40 = arith.maximumf %38, %39 : vector<10x128xf32>
    %c2_i32_19 = arith.constant 2 : i32
    %41 = arith.subi %0, %c2_i32_19 : i32
    %42 = tpu.iota {dimensions = array<i32: 0>} : vector<10x1xi32>
    %43 = vector.broadcast %41 : i32 to vector<10x1xi32>
    %44 = arith.addi %43, %42 : vector<10x1xi32>
    %c0_i32_20 = arith.constant 0 : i32
    %45 = vector.broadcast %c0_i32_20 : i32 to vector<10x1xi32>
    %46 = arith.cmpi sge, %44, %45 : vector<10x1xi32>
    %cst_21 = arith.constant 0.000000e+00 : f32
    %47 = vector.shape_cast %46 : vector<10x1xi1> to vector<10x1xi1>
    %48 = vector.broadcast %47 : vector<10x1xi1> to vector<10x128xi1>
    %49 = vector.broadcast %cst_21 : f32 to vector<10x128xf32>
    %50 = arith.select %48, %40, %49 : vector<10x128xi1>, vector<10x128xf32>
    %c0_22 = arith.constant 0 : index
    %c0_23 = arith.constant 0 : index
    %51 = vector.load %arg11[%c0_22, %c0_23] : memref<10x128xf32, #tpu.memory_space<vmem>>, vector<10x128xf32>
    tpu.vector_store %arg11[%c0_22, %c0_23], %50 {strides = array<i32>} : memref<10x128xf32, #tpu.memory_space<vmem>>, vector<10x128xf32>,
    %c0_24 = arith.constant 0 : index
    %c0_25 = arith.constant 0 : index
    %52 = vector.load %arg11[%c0_24, %c0_25] : memref<10x128xf32, #tpu.memory_space<vmem>>, vector<8x128xf32>
    %c1 = arith.constant 1 : index
    %c0_26 = arith.constant 0 : index
    %53 = vector.load %arg11[%c1, %c0_26] : memref<10x128xf32, #tpu.memory_space<vmem>>, vector<8x128xf32>
    %c2 = arith.constant 2 : index
    %c0_27 = arith.constant 0 : index
    %54 = vector.load %arg11[%c2, %c0_27] : memref<10x128xf32, #tpu.memory_space<vmem>>, vector<8x128xf32>
    %55 = tpu.concatenate %52, %53, %54 in 1 : vector<8x128xf32>, vector<8x128xf32>, vector<8x128xf32> -> vector<8x384xf32>
    %c0_28 = arith.constant 0 : index
    %c0_29 = arith.constant 0 : index
    %56 = vector.load %arg5[%c0_28, %c0_29] : memref<384x128xf32, #tpu.memory_space<vmem>>, vector<384x128xf32>
    %cst_30 = arith.constant dense<0.000000e+00> : vector<8x128xf32>
    %57 = tpu.matmul %55, %56, %cst_30 {dimension_numbers = #tpu.dot_dimension_numbers<[1], [0], [0], [1], [0, 0, 1, 1], [], []>} : vector<8x384xf32>, vector<384x128xf32>, vector<8x128xf32> -> vector<8x128xf32>
    %c0_31 = arith.constant 0 : index
    %c0_32 = arith.constant 0 : index
    %58 = vector.load %arg6[%c0_31, %c0_32] : memref<1x128xf32, #tpu.memory_space<vmem>>, vector<1x128xf32>
    %59 = vector.broadcast %58 : vector<1x128xf32> to vector<8x128xf32>
    %60 = arith.addf %57, %59 : vector<8x128xf32>
    %cst_33 = arith.constant 0.000000e+00 : f32
    %61 = vector.broadcast %cst_33 : f32 to vector<8x128xf32>
    %62 = arith.maximumf %60, %61 : vector<8x128xf32>
    %63 = arith.index_cast %10 : i32 to index
    %c8 = arith.constant 8 : index
    %c0_34 = arith.constant 0 : index
    %64 = vector.load %arg10[%63, %c8, %c0_34] : memref<2x16x128xf32, #tpu.memory_space<vmem>>, vector<1x8x128xf32>
    %65 = vector.shape_cast %64 : vector<1x8x128xf32> to vector<8x128xf32>
    %c0_35 = arith.constant 0 : index
    %c0_36 = arith.constant 0 : index
    %66 = vector.load %arg7[%c0_35, %c0_36] : memref<128x128xf32, #tpu.memory_space<vmem>>, vector<128x128xf32>
    %cst_37 = arith.constant dense<0.000000e+00> : vector<8x128xf32>
    %67 = tpu.matmul %65, %66, %cst_37 {dimension_numbers = #tpu.dot_dimension_numbers<[1], [0], [0], [1], [0, 0, 1, 1], [], []>} : vector<8x128xf32>, vector<128x128xf32>, vector<8x128xf32> -> vector<8x128xf32>
    %c0_38 = arith.constant 0 : index
    %c0_39 = arith.constant 0 : index
    %68 = vector.load %arg8[%c0_38, %c0_39] : memref<1x128xf32, #tpu.memory_space<vmem>>, vector<1x128xf32>
    %69 = vector.broadcast %68 : vector<1x128xf32> to vector<8x128xf32>
    %70 = arith.addf %67, %69 : vector<8x128xf32>
    %71 = arith.addf %62, %70 : vector<8x128xf32>
    %cst_40 = arith.constant 0.000000e+00 : f32
    %72 = vector.broadcast %cst_40 : f32 to vector<8x128xf32>
    %73 = arith.maximumf %71, %72 : vector<8x128xf32>
    %c0_41 = arith.constant 0 : index
    %c0_42 = arith.constant 0 : index
    %c0_43 = arith.constant 0 : index
    %74 = vector.load %arg9[%c0_41, %c0_42, %c0_43] : memref<1x8x128xf32, #tpu.memory_space<vmem>>, vector<1x8x128xf32>
    %75 = vector.shape_cast %74 : vector<1x8x128xf32> to vector<8x128xf32>
    %76 = vector.shape_cast %73 : vector<8x128xf32> to vector<1x8x128xf32>
    tpu.vector_store %arg9[%c0_41, %c0_42, %c0_43], %76 {strides = array<i32>} : memref<1x8x128xf32, #tpu.memory_space<vmem>>, vector<1x8x128xf32>,
    return
  }
  func.func @transform_1(%arg0: i32, %arg1: i32) -> (i32, i32) {
    %c0_i32 = arith.constant 0 : i32
    %c0_i32_0 = arith.constant 0 : i32
    %c0_i32_1 = arith.constant 0 : i32
    return %c0_i32, %c0_i32_0 : i32, i32
  }
  func.func @transform_2(%arg0: i32, %arg1: i32) -> (i32, i32) {
    %c0_i32 = arith.constant 0 : i32
    %c0_i32_0 = arith.constant 0 : i32
    %c0_i32_1 = arith.constant 0 : i32
    return %c0_i32, %c0_i32_0 : i32, i32
  }
  func.func @transform_3(%arg0: i32, %arg1: i32) -> (i32, i32) {
    %c0_i32 = arith.constant 0 : i32
    %c0_i32_0 = arith.constant 0 : i32
    %c0_i32_1 = arith.constant 0 : i32
    return %c0_i32, %c0_i32_0 : i32, i32
  }
  func.func @transform_4(%arg0: i32, %arg1: i32) -> (i32, i32) {
    %c0_i32 = arith.constant 0 : i32
    %c0_i32_0 = arith.constant 0 : i32
    %c0_i32_1 = arith.constant 0 : i32
    return %c0_i32, %c0_i32_0 : i32, i32
  }
  func.func @transform_5(%arg0: i32, %arg1: i32) -> (i32, i32) {
    %c0_i32 = arith.constant 0 : i32
    %c0_i32_0 = arith.constant 0 : i32
    %c0_i32_1 = arith.constant 0 : i32
    return %c0_i32, %c0_i32_0 : i32, i32
  }
  func.func @transform_6(%arg0: i32, %arg1: i32) -> (i32, i32) {
    %c0_i32 = arith.constant 0 : i32
    %c0_i32_0 = arith.constant 0 : i32
    %c0_i32_1 = arith.constant 0 : i32
    return %c0_i32, %c0_i32_0 : i32, i32
  }
  func.func @transform_7(%arg0: i32, %arg1: i32) -> (i32, i32, i32) {
    %c0_i32 = arith.constant 0 : i32
    %c0_i32_0 = arith.constant 0 : i32
    return %arg0, %arg1, %c0_i32 : i32, i32, i32
  }
}

module attributes {stable_mosaic.version = 11 : i64} {
  func.func @kernel(%arg0: i32, %arg1: i32, %arg2: memref<2x16x128xf32, #tpu.memory_space<any>>, %arg3: memref<384x128xf32, #tpu.memory_space<vmem>>, %arg4: memref<1x128xf32, #tpu.memory_space<vmem>>, %arg5: memref<384x128xf32, #tpu.memory_space<vmem>>, %arg6: memref<1x128xf32, #tpu.memory_space<vmem>>, %arg7: memref<1x8x128xf32, #tpu.memory_space<vmem>>, %arg8: memref<2x16x128xf32, #tpu.memory_space<vmem>>, %arg9: memref<12x128xf32, #tpu.memory_space<vmem>>, %arg10: memref<2x!tpu.dma_semaphore, #tpu.memory_space<semaphore_mem>>) attributes {dimension_semantics = [#tpu.dimension_semantics<parallel>, #tpu.dimension_semantics<arbitrary>], iteration_bounds = array<i64: 2, 2>, scalar_prefetch = 0 : i64, scratch_operands = 3 : i64, tpu.core_type = #tpu.core_type<tc>, window_params = [{}, {pipeline_mode = #tpu.pipeline_mode<synchronous>, transform_indices = @transform_1, window_bounds = array<i64: 384, 128>}, {pipeline_mode = #tpu.pipeline_mode<synchronous>, transform_indices = @transform_2, window_bounds = array<i64: 1, 128>}, {pipeline_mode = #tpu.pipeline_mode<synchronous>, transform_indices = @transform_3, window_bounds = array<i64: 384, 128>}, {pipeline_mode = #tpu.pipeline_mode<synchronous>, transform_indices = @transform_4, window_bounds = array<i64: 1, 128>}, {transform_indices = @transform_5, window_bounds = array<i64: 1, 8, 128>}]} {
    %c8_i32 = arith.constant 8 : i32
    %0 = arith.muli %arg1, %c8_i32 : i32
    %c2_i32 = arith.constant 2 : i32
    %c0_i32 = arith.constant 0 : i32
    %1 = arith.cmpi eq, %c2_i32, %c0_i32 : i32
    %c1_i32 = arith.constant 1 : i32
    %2 = arith.select %1, %c1_i32, %c2_i32 : i32
    %3 = arith.remsi %arg1, %2 : i32
    %c0_i32_0 = arith.constant 0 : i32
    %4 = arith.cmpi ne, %3, %c0_i32_0 : i32
    %c0_i32_1 = arith.constant 0 : i32
    %5 = arith.cmpi slt, %3, %c0_i32_1 : i32
    %c0_i32_2 = arith.constant 0 : i32
    %6 = arith.cmpi slt, %2, %c0_i32_2 : i32
    %7 = arith.xori %5, %6 : i1
    %8 = arith.andi %7, %4 : i1
    %9 = arith.addi %3, %2 : i32
    %10 = arith.select %8, %9, %3 : i32
    %c0_i32_3 = arith.constant 0 : i32
    %11 = arith.cmpi eq, %arg1, %c0_i32_3 : i32
    %12 = arith.extui %11 : i1 to i32
    %c0_i32_4 = arith.constant 0 : i32
    %13 = arith.cmpi ne, %12, %c0_i32_4 : i32
    scf.if %13 {
      %cst_41 = arith.constant 0.000000e+00 : f32
      %72 = vector.broadcast %cst_41 : f32 to vector<8x128xf32>
      %c0_42 = arith.constant 0 : index
      %c0_43 = arith.constant 0 : index
      %c0_44 = arith.constant 0 : index
      %73 = vector.load %arg8[%c0_42, %c0_43, %c0_44] : memref<2x16x128xf32, #tpu.memory_space<vmem>>, vector<1x8x128xf32>
      %74 = vector.shape_cast %73 : vector<1x8x128xf32> to vector<8x128xf32>
      %75 = vector.shape_cast %72 : vector<8x128xf32> to vector<1x8x128xf32>
      tpu.vector_store %arg8[%c0_42, %c0_43, %c0_44], %75 {strides = array<i32>} : memref<2x16x128xf32, #tpu.memory_space<vmem>>, vector<1x8x128xf32>,
      %c0_i32_45 = arith.constant 0 : i32
      %c0_i32_46 = arith.constant 0 : i32
      %c0_i32_47 = arith.constant 0 : i32
      %c0_i32_48 = arith.constant 0 : i32
      %76 = tpu.memref_slice %arg2[%arg0, %c0_i32_47, %c0_i32_48] : memref<2x16x128xf32, #tpu.memory_space<any>> -> memref<1x8x128xf32, #tpu.memory_space<any>>
      %77 = tpu.memref_squeeze %76 : memref<1x8x128xf32, #tpu.memory_space<any>> -> memref<8x128xf32, #tpu.memory_space<any>>
      %c8_i32_49 = arith.constant 8 : i32
      %c0_i32_50 = arith.constant 0 : i32
      %78 = tpu.memref_slice %arg8[%c0_i32_45, %c8_i32_49, %c0_i32_50] : memref<2x16x128xf32, #tpu.memory_space<vmem>> -> memref<1x8x128xf32, #tpu.memory_space<vmem>>
      %79 = tpu.memref_squeeze %78 : memref<1x8x128xf32, #tpu.memory_space<vmem>> -> memref<8x128xf32, #tpu.memory_space<vmem>>
      %80 = tpu.memref_slice %arg10[%c0_i32_46] : memref<2x!tpu.dma_semaphore, #tpu.memory_space<semaphore_mem>> -> memref<1x!tpu.dma_semaphore, #tpu.memory_space<semaphore_mem>>
      %81 = tpu.memref_squeeze %80 : memref<1x!tpu.dma_semaphore, #tpu.memory_space<semaphore_mem>> -> memref<!tpu.dma_semaphore, #tpu.memory_space<semaphore_mem>>
      tpu.enqueue_dma source(%77 : memref<8x128xf32, #tpu.memory_space<any>>) target(%79 : memref<8x128xf32, #tpu.memory_space<vmem>>) target_semaphore(%81 : memref<!tpu.dma_semaphore, #tpu.memory_space<semaphore_mem>>)
    } else {
    }
    %c1_i32_5 = arith.constant 1 : i32
    %14 = arith.addi %arg1, %c1_i32_5 : i32
    %c2_i32_6 = arith.constant 2 : i32
    %15 = arith.cmpi slt, %14, %c2_i32_6 : i32
    %16 = arith.extui %15 : i1 to i32
    %c0_i32_7 = arith.constant 0 : i32
    %17 = arith.cmpi ne, %16, %c0_i32_7 : i32
    scf.if %17 {
      %c1_i32_41 = arith.constant 1 : i32
      %72 = arith.addi %arg1, %c1_i32_41 : i32
      %c1_i32_42 = arith.constant 1 : i32
      %73 = arith.subi %c1_i32_42, %10 : i32
      %c8_i32_43 = arith.constant 8 : i32
      %74 = arith.muli %72, %c8_i32_43 : i32
      %c8_i32_44 = arith.constant 8 : i32
      %75 = arith.subi %74, %c8_i32_44 : i32
      %76 = tpu.assume_multiple %75, 8 : i32
      %c0_i32_45 = arith.constant 0 : i32
      %77 = tpu.memref_slice %arg2[%arg0, %76, %c0_i32_45] : memref<2x16x128xf32, #tpu.memory_space<any>> -> memref<1x16x128xf32, #tpu.memory_space<any>>
      %78 = tpu.memref_squeeze %77 : memref<1x16x128xf32, #tpu.memory_space<any>> -> memref<16x128xf32, #tpu.memory_space<any>>
      %c0_i32_46 = arith.constant 0 : i32
      %c0_i32_47 = arith.constant 0 : i32
      %79 = tpu.memref_slice %arg8[%73, %c0_i32_46, %c0_i32_47] : memref<2x16x128xf32, #tpu.memory_space<vmem>> -> memref<1x16x128xf32, #tpu.memory_space<vmem>>
      %80 = tpu.memref_squeeze %79 : memref<1x16x128xf32, #tpu.memory_space<vmem>> -> memref<16x128xf32, #tpu.memory_space<vmem>>
      %81 = tpu.memref_slice %arg10[%73] : memref<2x!tpu.dma_semaphore, #tpu.memory_space<semaphore_mem>> -> memref<1x!tpu.dma_semaphore, #tpu.memory_space<semaphore_mem>>
      %82 = tpu.memref_squeeze %81 : memref<1x!tpu.dma_semaphore, #tpu.memory_space<semaphore_mem>> -> memref<!tpu.dma_semaphore, #tpu.memory_space<semaphore_mem>>
      tpu.enqueue_dma source(%78 : memref<16x128xf32, #tpu.memory_space<any>>) target(%80 : memref<16x128xf32, #tpu.memory_space<vmem>>) target_semaphore(%82 : memref<!tpu.dma_semaphore, #tpu.memory_space<semaphore_mem>>)
    } else {
    }
    %c0_i32_8 = arith.constant 0 : i32
    %18 = arith.cmpi eq, %arg1, %c0_i32_8 : i32
    %19 = arith.extui %18 : i1 to i32
    %c0_i32_9 = arith.constant 0 : i32
    %20 = arith.cmpi ne, %19, %c0_i32_9 : i32
    scf.if %20 {
      %c0_i32_41 = arith.constant 0 : i32
      %c0_i32_42 = arith.constant 0 : i32
      %c0_i32_43 = arith.constant 0 : i32
      %c0_i32_44 = arith.constant 0 : i32
      %72 = tpu.memref_slice %arg2[%arg0, %c0_i32_43, %c0_i32_44] : memref<2x16x128xf32, #tpu.memory_space<any>> -> memref<1x8x128xf32, #tpu.memory_space<any>>
      %73 = tpu.memref_squeeze %72 : memref<1x8x128xf32, #tpu.memory_space<any>> -> memref<8x128xf32, #tpu.memory_space<any>>
      %c8_i32_45 = arith.constant 8 : i32
      %c0_i32_46 = arith.constant 0 : i32
      %74 = tpu.memref_slice %arg8[%c0_i32_41, %c8_i32_45, %c0_i32_46] : memref<2x16x128xf32, #tpu.memory_space<vmem>> -> memref<1x8x128xf32, #tpu.memory_space<vmem>>
      %75 = tpu.memref_squeeze %74 : memref<1x8x128xf32, #tpu.memory_space<vmem>> -> memref<8x128xf32, #tpu.memory_space<vmem>>
      %76 = tpu.memref_slice %arg10[%c0_i32_42] : memref<2x!tpu.dma_semaphore, #tpu.memory_space<semaphore_mem>> -> memref<1x!tpu.dma_semaphore, #tpu.memory_space<semaphore_mem>>
      %77 = tpu.memref_squeeze %76 : memref<1x!tpu.dma_semaphore, #tpu.memory_space<semaphore_mem>> -> memref<!tpu.dma_semaphore, #tpu.memory_space<semaphore_mem>>
      tpu.wait_dma2 semaphore(%77 : memref<!tpu.dma_semaphore, #tpu.memory_space<semaphore_mem>>) src(%73 : memref<8x128xf32, #tpu.memory_space<any>>) dst(%75 : memref<8x128xf32, #tpu.memory_space<vmem>>)
    } else {
    }
    %c0_i32_10 = arith.constant 0 : i32
    %21 = arith.cmpi sgt, %arg1, %c0_i32_10 : i32
    %22 = arith.extui %21 : i1 to i32
    %c0_i32_11 = arith.constant 0 : i32
    %23 = arith.cmpi ne, %22, %c0_i32_11 : i32
    scf.if %23 {
      %c8_i32_41 = arith.constant 8 : i32
      %72 = arith.muli %arg1, %c8_i32_41 : i32
      %c8_i32_42 = arith.constant 8 : i32
      %73 = arith.subi %72, %c8_i32_42 : i32
      %74 = tpu.assume_multiple %73, 8 : i32
      %c0_i32_43 = arith.constant 0 : i32
      %75 = tpu.memref_slice %arg2[%arg0, %74, %c0_i32_43] : memref<2x16x128xf32, #tpu.memory_space<any>> -> memref<1x16x128xf32, #tpu.memory_space<any>>
      %76 = tpu.memref_squeeze %75 : memref<1x16x128xf32, #tpu.memory_space<any>> -> memref<16x128xf32, #tpu.memory_space<any>>
      %c0_i32_44 = arith.constant 0 : i32
      %c0_i32_45 = arith.constant 0 : i32
      %77 = tpu.memref_slice %arg8[%10, %c0_i32_44, %c0_i32_45] : memref<2x16x128xf32, #tpu.memory_space<vmem>> -> memref<1x16x128xf32, #tpu.memory_space<vmem>>
      %78 = tpu.memref_squeeze %77 : memref<1x16x128xf32, #tpu.memory_space<vmem>> -> memref<16x128xf32, #tpu.memory_space<vmem>>
      %79 = tpu.memref_slice %arg10[%10] : memref<2x!tpu.dma_semaphore, #tpu.memory_space<semaphore_mem>> -> memref<1x!tpu.dma_semaphore, #tpu.memory_space<semaphore_mem>>
      %80 = tpu.memref_squeeze %79 : memref<1x!tpu.dma_semaphore, #tpu.memory_space<semaphore_mem>> -> memref<!tpu.dma_semaphore, #tpu.memory_space<semaphore_mem>>
      tpu.wait_dma2 semaphore(%80 : memref<!tpu.dma_semaphore, #tpu.memory_space<semaphore_mem>>) src(%76 : memref<16x128xf32, #tpu.memory_space<any>>) dst(%78 : memref<16x128xf32, #tpu.memory_space<vmem>>)
    } else {
    }
    %24 = arith.index_cast %10 : i32 to index
    %c0 = arith.constant 0 : index
    %c0_12 = arith.constant 0 : index
    %25 = vector.load %arg8[%24, %c0, %c0_12] : memref<2x16x128xf32, #tpu.memory_space<vmem>>, vector<1x12x128xf32>
    %26 = vector.shape_cast %25 : vector<1x12x128xf32> to vector<12x128xf32>
    %27 = arith.index_cast %10 : i32 to index
    %c2 = arith.constant 2 : index
    %c0_13 = arith.constant 0 : index
    %28 = vector.load %arg8[%27, %c2, %c0_13] : memref<2x16x128xf32, #tpu.memory_space<vmem>>, vector<1x12x128xf32>
    %29 = vector.shape_cast %28 : vector<1x12x128xf32> to vector<12x128xf32>
    %30 = arith.index_cast %10 : i32 to index
    %c4 = arith.constant 4 : index
    %c0_14 = arith.constant 0 : index
    %31 = vector.load %arg8[%30, %c4, %c0_14] : memref<2x16x128xf32, #tpu.memory_space<vmem>>, vector<1x12x128xf32>
    %32 = vector.shape_cast %31 : vector<1x12x128xf32> to vector<12x128xf32>
    %33 = tpu.concatenate %26, %29, %32 in 1 : vector<12x128xf32>, vector<12x128xf32>, vector<12x128xf32> -> vector<12x384xf32>
    %c0_15 = arith.constant 0 : index
    %c0_16 = arith.constant 0 : index
    %34 = vector.load %arg3[%c0_15, %c0_16] : memref<384x128xf32, #tpu.memory_space<vmem>>, vector<384x128xf32>
    %cst = arith.constant dense<0.000000e+00> : vector<12x128xf32>
    %35 = tpu.matmul %33, %34, %cst {dimension_numbers = #tpu.dot_dimension_numbers<[1], [0], [0], [1], [0, 0, 1, 1], [], []>} : vector<12x384xf32>, vector<384x128xf32>, vector<12x128xf32> -> vector<12x128xf32>
    %c0_17 = arith.constant 0 : index
    %c0_18 = arith.constant 0 : index
    %36 = vector.load %arg4[%c0_17, %c0_18] : memref<1x128xf32, #tpu.memory_space<vmem>>, vector<1x128xf32>
    %37 = vector.broadcast %36 : vector<1x128xf32> to vector<12x128xf32>
    %38 = arith.addf %35, %37 : vector<12x128xf32>
    %cst_19 = arith.constant 0.000000e+00 : f32
    %39 = vector.broadcast %cst_19 : f32 to vector<12x128xf32>
    %40 = arith.maximumf %38, %39 : vector<12x128xf32>
    %c4_i32 = arith.constant 4 : i32
    %41 = arith.subi %0, %c4_i32 : i32
    %42 = tpu.iota {dimensions = array<i32: 0>} : vector<12x1xi32>
    %43 = vector.broadcast %41 : i32 to vector<12x1xi32>
    %44 = arith.addi %43, %42 : vector<12x1xi32>
    %c0_i32_20 = arith.constant 0 : i32
    %45 = vector.broadcast %c0_i32_20 : i32 to vector<12x1xi32>
    %46 = arith.cmpi sge, %44, %45 : vector<12x1xi32>
    %cst_21 = arith.constant 0.000000e+00 : f32
    %47 = vector.shape_cast %46 : vector<12x1xi1> to vector<12x1xi1>
    %48 = vector.broadcast %47 : vector<12x1xi1> to vector<12x128xi1>
    %49 = vector.broadcast %cst_21 : f32 to vector<12x128xf32>
    %50 = arith.select %48, %40, %49 : vector<12x128xi1>, vector<12x128xf32>
    %c0_22 = arith.constant 0 : index
    %c0_23 = arith.constant 0 : index
    %51 = vector.load %arg9[%c0_22, %c0_23] : memref<12x128xf32, #tpu.memory_space<vmem>>, vector<12x128xf32>
    tpu.vector_store %arg9[%c0_22, %c0_23], %50 {strides = array<i32>} : memref<12x128xf32, #tpu.memory_space<vmem>>, vector<12x128xf32>,
    %c0_24 = arith.constant 0 : index
    %c0_25 = arith.constant 0 : index
    %52 = vector.load %arg9[%c0_24, %c0_25] : memref<12x128xf32, #tpu.memory_space<vmem>>, vector<8x128xf32>
    %c2_26 = arith.constant 2 : index
    %c0_27 = arith.constant 0 : index
    %53 = vector.load %arg9[%c2_26, %c0_27] : memref<12x128xf32, #tpu.memory_space<vmem>>, vector<8x128xf32>
    %c4_28 = arith.constant 4 : index
    %c0_29 = arith.constant 0 : index
    %54 = vector.load %arg9[%c4_28, %c0_29] : memref<12x128xf32, #tpu.memory_space<vmem>>, vector<8x128xf32>
    %55 = tpu.concatenate %52, %53, %54 in 1 : vector<8x128xf32>, vector<8x128xf32>, vector<8x128xf32> -> vector<8x384xf32>
    %c0_30 = arith.constant 0 : index
    %c0_31 = arith.constant 0 : index
    %56 = vector.load %arg5[%c0_30, %c0_31] : memref<384x128xf32, #tpu.memory_space<vmem>>, vector<384x128xf32>
    %cst_32 = arith.constant dense<0.000000e+00> : vector<8x128xf32>
    %57 = tpu.matmul %55, %56, %cst_32 {dimension_numbers = #tpu.dot_dimension_numbers<[1], [0], [0], [1], [0, 0, 1, 1], [], []>} : vector<8x384xf32>, vector<384x128xf32>, vector<8x128xf32> -> vector<8x128xf32>
    %c0_33 = arith.constant 0 : index
    %c0_34 = arith.constant 0 : index
    %58 = vector.load %arg6[%c0_33, %c0_34] : memref<1x128xf32, #tpu.memory_space<vmem>>, vector<1x128xf32>
    %59 = vector.broadcast %58 : vector<1x128xf32> to vector<8x128xf32>
    %60 = arith.addf %57, %59 : vector<8x128xf32>
    %cst_35 = arith.constant 0.000000e+00 : f32
    %61 = vector.broadcast %cst_35 : f32 to vector<8x128xf32>
    %62 = arith.maximumf %60, %61 : vector<8x128xf32>
    %63 = arith.index_cast %10 : i32 to index
    %c8 = arith.constant 8 : index
    %c0_36 = arith.constant 0 : index
    %64 = vector.load %arg8[%63, %c8, %c0_36] : memref<2x16x128xf32, #tpu.memory_space<vmem>>, vector<1x8x128xf32>
    %65 = vector.shape_cast %64 : vector<1x8x128xf32> to vector<8x128xf32>
    %66 = arith.addf %62, %65 : vector<8x128xf32>
    %cst_37 = arith.constant 0.000000e+00 : f32
    %67 = vector.broadcast %cst_37 : f32 to vector<8x128xf32>
    %68 = arith.maximumf %66, %67 : vector<8x128xf32>
    %c0_38 = arith.constant 0 : index
    %c0_39 = arith.constant 0 : index
    %c0_40 = arith.constant 0 : index
    %69 = vector.load %arg7[%c0_38, %c0_39, %c0_40] : memref<1x8x128xf32, #tpu.memory_space<vmem>>, vector<1x8x128xf32>
    %70 = vector.shape_cast %69 : vector<1x8x128xf32> to vector<8x128xf32>
    %71 = vector.shape_cast %68 : vector<8x128xf32> to vector<1x8x128xf32>
    tpu.vector_store %arg7[%c0_38, %c0_39, %c0_40], %71 {strides = array<i32>} : memref<1x8x128xf32, #tpu.memory_space<vmem>>, vector<1x8x128xf32>,
    return
  }
  func.func @transform_1(%arg0: i32, %arg1: i32) -> (i32, i32) {
    %c0_i32 = arith.constant 0 : i32
    %c0_i32_0 = arith.constant 0 : i32
    %c0_i32_1 = arith.constant 0 : i32
    return %c0_i32, %c0_i32_0 : i32, i32
  }
  func.func @transform_2(%arg0: i32, %arg1: i32) -> (i32, i32) {
    %c0_i32 = arith.constant 0 : i32
    %c0_i32_0 = arith.constant 0 : i32
    %c0_i32_1 = arith.constant 0 : i32
    return %c0_i32, %c0_i32_0 : i32, i32
  }
  func.func @transform_3(%arg0: i32, %arg1: i32) -> (i32, i32) {
    %c0_i32 = arith.constant 0 : i32
    %c0_i32_0 = arith.constant 0 : i32
    %c0_i32_1 = arith.constant 0 : i32
    return %c0_i32, %c0_i32_0 : i32, i32
  }
  func.func @transform_4(%arg0: i32, %arg1: i32) -> (i32, i32) {
    %c0_i32 = arith.constant 0 : i32
    %c0_i32_0 = arith.constant 0 : i32
    %c0_i32_1 = arith.constant 0 : i32
    return %c0_i32, %c0_i32_0 : i32, i32
  }
  func.func @transform_5(%arg0: i32, %arg1: i32) -> (i32, i32, i32) {
    %c0_i32 = arith.constant 0 : i32
    %c0_i32_0 = arith.constant 0 : i32
    return %arg0, %arg1, %c0_i32 : i32, i32, i32
  }
}

</mosaic_0001>

<bundles_post_ra>
// kernel: tcn_forward.2
= control target key start
LH: loop header
LB: loop body
LE: loop exit
PB: predicated region body
PF: predicated region fallthrough
CT: control target
= control target key end

     0   :  { %12 = vsyncpa [#allocation6], 0  ;;  %s1959_s0 = inlined_call_operand.vmem [shape: f32[2,16,128], index: 0, kind: input, shape index: {}]   ;;  %s1960_s1 = inlined_call_operand.hbm [shape: f32[384,128], index: 1, kind: input, shape index: {}]   ;;  %s1961_s2 = inlined_call_operand.vmem [shape: f32[1,128], index: 2, kind: input, shape index: {}]   ;;  %s1962_s3 = inlined_call_operand.hbm [shape: f32[384,128], index: 3, kind: input, shape index: {}]   ;;  %s1963_s4 = inlined_call_operand.vmem [shape: f32[1,128], index: 4, kind: input, shape index: {}]   ;;  %s1964_s5 = inlined_call_operand.vmem [shape: f32[128,128], index: 5, kind: input, shape index: {}]   ;;  %s1965_s6 = inlined_call_operand.vmem [shape: f32[1,128], index: 6, kind: input, shape index: {}]   ;;  %s1966_s7 = inlined_call_operand.vmem [shape: f32[2,16,128], index: 7, kind: output, shape index: {}]  }
   0x1   :  { %13 = vsyncpa [#allocation8], 0  ;;  %s1720_s24 = smov 0   ;;  %s1722_s25 = smov 0  }
   0x2   :  { %s1724_s26 = smov 0   ;;  %s1726_s27 = smov 0  }
   0x3   :  { %s1728_s28 = smov 0  }
   0x4 LB: > { %s1078_s29 = sadd.s32 4294967295, %s1670_s28   ;;  %s28_s30 = sadd.s32 1, %s1662_s26  ;;  %s1670_s28 = sphi %s1728_s28, %s19_s28   ;;  %s1666_s27 = sphi %s1726_s27, %s1980_s27   ;;  %s1662_s26 = sphi %s1724_s26, %s1979_s26   ;;  %s1658_s25 = sphi %s1722_s25, %s1978_s25   ;;  %s1654_s24 = sphi %s1720_s24, %s1977_s24  }
   0x5   : > { %p29_p0 = scmp.ge.s32.totalorder %s28_s30, 2  ;;  %s31_s8 = sadd.s32 1, %s1666_s27 }
   0x6   : > { %p1080_p1 = scmp.ge.s32.totalorder %s1670_s28, 1  ;;  %p190_p2 = scmp.lt.s32.totalorder %s1670_s28, 5 }
   0x7   : > { %s1982_s30 = smov (%p29_p0, %s28_s30), 0  ;;  %s1984_s8 = smov (!%p29_p0, %s31_s8), %s1666_s27 }
   0x8   : > { %p1753_p3 = pnand %p1080_p1, %p190_p2  ;;  %p33_p4 = scmp.ge.s32.totalorder %s1984_s8, 2 }
   0x9   : > { %p1757_p5 = scmp.eq.s32.totalorder %s1078_s29, 0  ;;  %s1672_s11 = smov [#allocation5]  }
   0xa   : > { %s1970_s9 = scalar_select %p1753_p3, 1, 0 }
   0xb   : > { %s1971_s10 = scalar_select %p1757_p5, 1, 0 }
   0xc   : > { %p1498_p6 = pneg %p1753_p3  ;;  %s1986_s8 = smov (%p33_p4, %s1984_s8), 0 }
   0xd   : > { %1972 = sst [smem:[#allocation15_spill]] %s1986_s8  ;;  %s202_s12 = sshll.u32 %s1672_s11, 4  ;;  %s203_s12 = int_to_ptr.vmem [resolvable:$true] %s202_s12 }
   0xe   : > { %p1767_p7 = pnand %p1757_p5, %p1498_p6  ;;  %s1560_s16 = scalar_lea.hbm %s1960_s1, 6144 }
   0xf   : > { %p1561_p8 = scmp.ne.s32.totalorder %s1960_s1, %s1560_s16  ;;  %p1567_p12 = scmp.lt.u32.totalorder %s1560_s16, %s1960_s1 }
  0x10   : > { %p1562_p9 = pneg %p1767_p7 }
  0x12   : > { %p1563_p10 = pnand %p1562_p9, %p1561_p8 }
  0x14   : > { %p1564_p11 = pneg %p1563_p10 }
  0x16   : > { %p1569_p13 = pnand %p1567_p12, %p1564_p11 }
  0x18   : > { %1572 = shalt.err (!%p1569_p13)
}
  0x19   : > { %s1573_s21 = scalar_lea.vmem %s203_s12, 6144  ;;  %p1581_p4 = scmp.lt.s32.totalorder %s203_s12, %s203_s12 }
  0x1a   : > { %p1574_p0 = scmp.ne.s32.totalorder %s203_s12, %s1573_s21  ;;  %p1582_p6 = scmp.lt.s32.totalorder %s1573_s21, %s1573_s21 }
  0x1c   : > { %p1576_p1 = pnand %p1574_p0, %p1562_p9  ;;  %p1583_p5 = por %p1582_p6, %p1581_p4 }
  0x1e   : > { %p1577_p2 = pneg %p1576_p1 }
  0x20   : > { %p1584_p3 = pnand %p1583_p5, %p1577_p2 }
  0x22   : > { %1587 = shalt.err (!%p1584_p3)
}
  0x23   : > { %s1673_s22 = smov 128   ;;  %s1674_s23 = smov 8  }
  0x24   : > { %1501 = dma.hbm_to_vmem [thread:$0]  (!%p1767_p7), %s1960_s1, 6144, %s203_s12, [#allocation6], %s1673_s22, %s1673_s22, %s1674_s23  }
  0x25   : > { %s1675_s14 = smov [#allocation7]   ;;  %s1588_s18 = scalar_lea.hbm %s1962_s3, 6144 }
  0x26   : > { %s218_s15 = sshll.u32 %s1675_s14, 4  ;;  %p1589_p3 = scmp.ne.s32.totalorder %s1962_s3, %s1588_s18  ;;  %s219_s15 = int_to_ptr.vmem [resolvable:$true] %s218_s15 }
  0x27   : > { %p1595_p10 = scmp.lt.u32.totalorder %s1588_s18, %s1962_s3 }
  0x28   : > { %p1591_p5 = pnand %p1589_p3, %p1562_p9 }
  0x2a   : > { %p1592_p8 = pneg %p1591_p5 }
  0x2c   : > { %p1597_p11 = pnand %p1595_p10, %p1592_p8 }
  0x2e   : > { %1600 = shalt.err (!%p1597_p11)
}
  0x2f   : > { %s1601_s12 = scalar_lea.vmem %s219_s15, 6144  ;;  %p1609_p1 = scmp.lt.s32.totalorder %s219_s15, %s219_s15 }
  0x30   : > { %p1602_p12 = scmp.ne.s32.totalorder %s219_s15, %s1601_s12  ;;  %p1610_p2 = scmp.lt.s32.totalorder %s1601_s12, %s1601_s12 }
  0x32   : > { %p1604_p13 = pnand %p1602_p12, %p1562_p9  ;;  %p1611_p4 = por %p1610_p2, %p1609_p1 }
  0x34   : > { %p1605_p0 = pneg %p1604_p13 }
  0x36   : > { %p1612_p6 = pnand %p1611_p4, %p1605_p0 }
  0x38   : > { %1615 = shalt.err (!%p1612_p6)
}
  0x39   : > { %1504 = dma.hbm_to_vmem [thread:$0]  (!%p1767_p7), %s1962_s3, 6144, %s219_s15, [#allocation8], %s1673_s22, %s1673_s22, %s1674_s23  }
  0x3a   : > { %p1974_p3 = scmp.ne.s32.totalorder %s1970_s9, 0 }
  0x3b   : > { %p1975_p5 = scmp.ne.s32.totalorder (!%p1974_p3), %s1971_s10, 0 }
  0x3c   : > { %243 = sbr.rel (%p1974_p3) target bundleno = 626 (0x272), region = 44 }
  0x43   : > { %1637 = dma.done.wait (%p1975_p5), [#allocation6], 6144  }
  0x44   : > { %1639 = vsyncadd (%p1975_p5), [#allocation6], 4294961152 }
  0x45   : > { %1641 = dma.done.wait (%p1975_p5), [#allocation8], 6144  }
  0x46   : > { %1643 = vsyncadd (%p1975_p5), [#allocation8], 4294961152  ;;  %p275_p7 = scmp.lt.s32.totalorder %s1658_s25, 1  ;;  %p277_p9 = scmp.lt.s32.totalorder %s1654_s24, 1 }
  0x47   : > { %s1088_s8 = sshll.u32 %s1654_s24, 3  ;;  %p284_p8 = scmp.lt.s32.totalorder %s1654_s24, 0 }
  0x48   : > { %s276_s9 = scalar_select %p275_p7, %s1658_s25, 1 }
  0x49   : > { %s278_s13 = scalar_select %p277_p9, %s1654_s24, 1 }
  0x4a   : > { %s1086_s22 = sshll.u32 %s276_s9, 1  ;;  %s285_s23 = ssub.s32 0, %s1654_s24 }
  0x4b   : > { %s280_s14 = sadd.s32 %s1086_s22, %s278_s13  ;;  %s1089_s15 = smin.u32 %s1654_s24, %s285_s23 }
  0x4c   : > { %s1087_s10 = sshll.u32 %s280_s14, 3  ;;  %s287_s16 = sand.u32 1, %s1089_s15  }
  0x4d   : > { %s1834_s19 = scalar_lea.vmem %s1966_s7, %s1087_s10  ;;  %s288_s20 = ssub.s32 0, %s287_s16 }
  0x4e   : > { %s1988_s20 = smov (!%p284_p8, %s288_s20), %s287_s16  ;;  %p1092_p11 = scmp.ne.s32.totalorder %s1654_s24, 0 }
  0x4f   : > { %p1091_p10 = scmp.lt.s32.totalorder %s1988_s20, 0  ;;  %s294_s21 = sadd.s32 2, %s1988_s20  ;;  %v1676_v0 = vmov (!%p1092_p11), 0.0  }
  0x50   : > { %299 = sbr.rel (%p1092_p11) target bundleno = 88 (0x58), region = 56  ;;  %s1093_s12 = sshll.u32 (!%p1092_p11), %s1658_s25, 4  ;;  %300 = vst [vmem:[#allocation2] sm:$0xff] (!%p1092_p11), %v1676_v0 }
  0x51   : > { %s1990_s21 = smov (!%p1091_p10, %s294_s21), %s1988_s20  ;;  %s302_s9 = scalar_lea.vmem (!%p1092_p11), %s1959_s0, %s1093_s12 }
  0x52   : > { %v336_v1 = vld [vmem:[%s302_s9] sm:$0xff] (!%p1092_p11) }
  0x53   : > { %337 = vst [vmem:[#allocation2 + $0x8] sm:$0xff] (!%p1092_p11), %v336_v1 }
  0x57   : > { %345 = vsyncadd [#allocation4], 128 }
  0x58 PF: > { %s346_s13 = sadd.s32 1, %s1654_s24 }
  0x59   : > { %p1094_p12 = scmp.ge.s32.totalorder %s346_s13, 2 }
  0x5a   : > { %s351_s22 = ssub.s32 (!%p1094_p12), 1, %s1990_s21  ;;  %s1111_s23 = sadd.s32 (!%p1094_p12), 8, %s1088_s8 }
  0x5b   : > { %350 = sbr.rel (%p1094_p12) target bundleno = 99 (0x63), region = 94  ;;  %s1096_s14 = sadd.s32 (!%p1094_p12), 4294967288, %s1111_s23 }
  0x5c   : > { %s1097_s15 = sshll.u32 (!%p1094_p12), %s1658_s25, 4  ;;  %s1098_s16 = sshll.u32 (!%p1094_p12), %s351_s22, 4 }
  0x5d   : > { %s355_s10 = sadd.s32 (!%p1094_p12), %s1097_s15, %s1096_s14  ;;  %s358_s12 = scalar_lea.vmem (!%p1094_p12), [#allocation2], %s1098_s16 }
  0x5e   : > { %s356_s20 = scalar_lea.vmem (!%p1094_p12), %s1959_s0, %s355_s10  ;;  %s359_s29 = scalar_lea.sflag (!%p1094_p12), [#allocation4], %s351_s22 }
  0x5f   : > { %v392_v2 = vld [vmem:[%s356_s20] sm:$0xff] (!%p1094_p12)  ;;  %v394_v3 = vld [vmem:[%s356_s20 + $0x8] sm:$0xff] (!%p1094_p12) }
  0x60   : > { %393 = vst [vmem:[%s358_s12] sm:$0xff] (!%p1094_p12), %v392_v2  ;;  %395 = vst [vmem:[%s358_s12 + $0x8] sm:$0xff] (!%p1094_p12), %v394_v3 }
  0x62   : > { %403 = vsyncadd %s359_s29, 256 }
  0x63 PF: > { %p1509_p13 = scmp.eq.s32.totalorder %s1654_s24, 0 }
  0x65   : > { %1645 = dma.done.wait (%p1509_p13), [#allocation4], 128 }
  0x66   : > { %1647 = vsyncadd (%p1509_p13), [#allocation4], 4294967168  ;;  %p1510_p0 = scmp.gt.s32.totalorder %s1654_s24, 0  ;;  %s415_s25 = scalar_lea.sflag [#allocation4], %s1990_s21 }
  0x68   : > { %1649 = dma.done.wait (%p1510_p0), %s415_s25, 256 }
  0x69   : > { %1651 = vsyncadd (%p1510_p0), %s415_s25, 4294967040  ;;  %v443_v4 = vld [vmem:[#allocation5 + $0x80] sm:$0xff]  ;;  %v444_v5 = vld [vmem:[#allocation5 + $0x88] sm:$0xff]  ;;  %s1101_s11 = sshll.u32 %s1990_s21, 4  ;;  %vm1678_vm0 = vmmov 0   ;;  %s1103_s21 = sadd.s32 4294967294, %s1088_s8 }
  0x6a   : > { %v427_v6 = vld [vmem:[#allocation5] sm:$0xff]  ;;  %v1342_v7 = vpack.c.bf16 %v444_v5, %v443_v4  ;;  %v428_v8 = vld [vmem:[#allocation5 + $0x8] sm:$0xff]  ;;  %v445_v9 = vld [vmem:[#allocation5 + $0x90] sm:$0xff]  ;;  %s1855_s9 = scalar_lea.vmem [#allocation2], %s1101_s11 }
  0x6b   : > { %v446_v10 = vld [vmem:[#allocation5 + $0x98] sm:$0xff]  ;;  %v1344_v11 = vpack.c.bf16 %v428_v8, %v427_v6  ;;  %v459_v13 = vld [vmem:[#allocation5 + $0x100] sm:$0xff]  ;;  %v460_v14 = vld [vmem:[#allocation5 + $0x108] sm:$0xff] }
  0x6c   : > { %v1346_v12 = vpack.c.bf16 %v446_v10, %v445_v9  ;;  %v429_v15 = vld [vmem:[#allocation5 + $0x10] sm:$0xff]  ;;  %1343 = vmatprep.subr.bf16.mxu0 %v1342_v7  ;;  %v1374_v16 = vpack.c.bf16 %v460_v14, %v459_v13  ;;  %v430_v17 = vld [vmem:[#allocation5 + $0x18] sm:$0xff]  ;;  %v447_v18 = vld [vmem:[#allocation5 + $0xa0] sm:$0xff] }
  0x6d   : > { %v448_v19 = vld [vmem:[#allocation5 + $0xa8] sm:$0xff]  ;;  %1345 = vmatpush3.bf16.msra.mxu0 %v1344_v11  ;;  %v1348_v20 = vpack.c.bf16 %v430_v17, %v429_v15  ;;  %v461_v21 = vld [vmem:[#allocation5 + $0x110] sm:$0xff]  ;;  %v462_v22 = vld [vmem:[#allocation5 + $0x118] sm:$0xff] }
  0x6e   : > { %1347 = vmatprep.subr.bf16.mxu0 %v1346_v12  ;;  %1375 = vmatprep.subr.bf16.mxu1 %v1374_v16  ;;  %v1350_v23 = vpack.c.bf16 %v448_v19, %v447_v18  ;;  %v1378_v24 = vpack.c.bf16 %v462_v22, %v461_v21  ;;  %v431_v25 = vld [vmem:[#allocation5 + $0x20] sm:$0xff]  ;;  %v432_v26 = vld [vmem:[#allocation5 + $0x28] sm:$0xff]  ;;  %v449_v27 = vld [vmem:[#allocation5 + $0xb0] sm:$0xff] }
  0x6f   : > { %1377 = vmatpush3.bf16.msra.mxu1 %v1374_v16  ;;  %v450_v28 = vld [vmem:[#allocation5 + $0xb8] sm:$0xff]  ;;  %v463_v29 = vld [vmem:[#allocation5 + $0x120] sm:$0xff]  ;;  %v464_v30 = vld [vmem:[#allocation5 + $0x128] sm:$0xff]  ;;  %v1352_v32 = vpack.c.bf16 %v432_v26, %v431_v25 }
  0x70   : > { %1379 = vmatprep.subr.bf16.mxu1 %v1378_v24  ;;  %v1382_v31 = vpack.c.bf16 %v464_v30, %v463_v29  ;;  %v465_v33 = vld [vmem:[#allocation5 + $0x130] sm:$0xff]  ;;  %v466_v34 = vld [vmem:[#allocation5 + $0x138] sm:$0xff]  ;;  %v1354_v35 = vpack.c.bf16 %v450_v28, %v449_v27  ;;  %v451_v38 = vld [vmem:[#allocation5 + $0xc0] sm:$0xff] }
  0x71   : > { %1349 = vmatpush3.bf16.msra.mxu0 %v1348_v20  ;;  %v433_v36 = vld [vmem:[#allocation5 + $0x30] sm:$0xff]  ;;  %v434_v37 = vld [vmem:[#allocation5 + $0x38] sm:$0xff]  ;;  %v452_v39 = vld [vmem:[#allocation5 + $0xc8] sm:$0xff]  ;;  %v1386_v40 = vpack.c.bf16 %v466_v34, %v465_v33  ;;  %v1677_v33 = vmov 0.0|0.0  }
  0x72   : > { %1351 = vmatprep.subr.bf16.mxu0 %v1350_v23  ;;  %v1356_v41 = vpack.c.bf16 %v434_v37, %v433_v36  ;;  %v467_v42 = vld [vmem:[#allocation5 + $0x140] sm:$0xff]  ;;  %v468_v43 = vld [vmem:[#allocation5 + $0x148] sm:$0xff]  ;;  %v1358_v44 = vpack.c.bf16 %v452_v39, %v451_v38  ;;  %v453_v47 = vld [vmem:[#allocation5 + $0xd0] sm:$0xff] }
  0x73   : > { %1381 = vmatpush3.bf16.msra.mxu1 %v1378_v24  ;;  %v435_v45 = vld [vmem:[#allocation5 + $0x40] sm:$0xff]  ;;  %v436_v46 = vld [vmem:[#allocation5 + $0x48] sm:$0xff]  ;;  %v454_v48 = vld [vmem:[#allocation5 + $0xd8] sm:$0xff]  ;;  %v1390_v49 = vpack.c.bf16 %v468_v43, %v467_v42 }
  0x74   : > { %1383 = vmatprep.subr.bf16.mxu1 %v1382_v31  ;;  %v423_v50 = vld [vmem:[%s1855_s9 + $0x5] sm:$0xff]  ;;  %v1360_v51 = vpack.c.bf16 %v436_v46, %v435_v45  ;;  %v1362_v54 = vpack.c.bf16 %v454_v48, %v453_v47  ;;  %v455_v58 = vld [vmem:[#allocation5 + $0xe0] sm:$0xff]  ;;  %v456_v59 = vld [vmem:[#allocation5 + $0xe8] sm:$0xff] }
  0x75   : > { %1353 = vmatpush3.bf16.msra.mxu0 %v1352_v32  ;;  %v469_v52 = vld [vmem:[#allocation5 + $0x150] sm:$0xff]  ;;  %v470_v53 = vld [vmem:[#allocation5 + $0x158] sm:$0xff]  ;;  %546 = vmatprep.mubr.f32.mxu0 %v423_v50  ;;  %v471_v62 = vld [vmem:[#allocation5 + $0x160] sm:$0xff]  ;;  %v1366_v0 = vpack.c.bf16 %v456_v59, %v455_v58 }
  0x76   : > { %1355 = vmatprep.subr.bf16.mxu0 %v1354_v35  ;;  %v437_v55 = vld [vmem:[#allocation5 + $0x50] sm:$0xff]  ;;  %v438_v56 = vld [vmem:[#allocation5 + $0x58] sm:$0xff]  ;;  %v1394_v60 = vpack.c.bf16 %v470_v53, %v469_v52  ;;  %v472_v63 = vld [vmem:[#allocation5 + $0x168] sm:$0xff] }
  0x77   : > { %1385 = vmatpush3.bf16.msra.mxu1 %v1382_v31  ;;  %v425_v57 = vld [vmem:[%s1855_s9 + $0x6] sm:$0xff]  ;;  %v1364_v61 = vpack.c.bf16 %v438_v56, %v437_v55  ;;  %v439_v1 = vld [vmem:[#allocation5 + $0x60] sm:$0xff]  ;;  %v440_v2 = vld [vmem:[#allocation5 + $0x68] sm:$0xff]  ;;  %v1398_v5 = vpack.c.bf16 %v472_v63, %v471_v62 }
  0x78   : > { %1387 = vmatprep.subr.bf16.mxu1 %v1386_v40  ;;  %1269 = vmatprep.mubr.f32.mxu1 %v425_v57  ;;  %v457_v3 = vld [vmem:[#allocation5 + $0xf0] sm:$0xff]  ;;  %v458_v4 = vld [vmem:[#allocation5 + $0xf8] sm:$0xff]  ;;  %v1368_v6 = vpack.c.bf16 %v440_v2, %v439_v1  ;;  %v670_v12 = vld [vmem:[#allocation7 + $0x80] sm:$0xff] }
  0x79   : > { %1357 = vmatpush3.bf16.msra.mxu0 %v1356_v41  ;;  %v473_v7 = vld [vmem:[#allocation5 + $0x170] sm:$0xff]  ;;  %v474_v8 = vld [vmem:[#allocation5 + $0x178] sm:$0xff]  ;;  %v1370_v9 = vpack.c.bf16 %v458_v4, %v457_v3  ;;  %v671_v13 = vld [vmem:[#allocation7 + $0x88] sm:$0xff] }
  0x7a   : > { %1359 = vmatprep.subr.bf16.mxu0 %v1358_v44  ;;  %v441_v10 = vld [vmem:[#allocation5 + $0x70] sm:$0xff]  ;;  %v442_v11 = vld [vmem:[#allocation5 + $0x78] sm:$0xff]  ;;  %v1402_v14 = vpack.c.bf16 %v474_v8, %v473_v7  ;;  %v1406_v16 = vpack.c.bf16 %v671_v13, %v670_v12  ;;  %v654_v17 = vld [vmem:[#allocation7] sm:$0xff] }
  0x7b   : > { %1389 = vmatpush3.bf16.msra.mxu1 %v1386_v40  ;;  %v1372_v15 = vpack.c.bf16 %v442_v11, %v441_v10  ;;  %v655_v18 = vld [vmem:[#allocation7 + $0x8] sm:$0xff]  ;;  %v672_v19 = vld [vmem:[#allocation7 + $0x90] sm:$0xff]  ;;  %v673_v20 = vld [vmem:[#allocation7 + $0x98] sm:$0xff] }
  0x7c   : > { %1391 = vmatprep.subr.bf16.mxu1 %v1390_v49  ;;  %v686_v21 = vld [vmem:[#allocation7 + $0x100] sm:$0xff]  ;;  %v687_v22 = vld [vmem:[#allocation7 + $0x108] sm:$0xff]  ;;  %v421_v23 = vld [vmem:[%s1855_s9 + $0x4] sm:$0xff]  ;;  %v1408_v24 = vpack.c.bf16 %v655_v18, %v654_v17  ;;  %v1410_v26 = vpack.c.bf16 %v673_v20, %v672_v19 }
  0x7d   : > { %1361 = vmatpush3.bf16.msra.mxu0 %v1360_v51  ;;  %v424_v25 = vld [vmem:[%s1855_s9 + $0xd] sm:$0x3]  ;;  %v656_v27 = vld [vmem:[#allocation7 + $0x10] sm:$0xff]  ;;  %v1439_v30 = vpack.c.bf16 %v687_v22, %v686_v21  ;;  %v674_v31 = vld [vmem:[#allocation7 + $0xa0] sm:$0xff] }
  0x7e   : > { %1363 = vmatprep.subr.bf16.mxu0 %v1362_v54  ;;  %v657_v28 = vld [vmem:[#allocation7 + $0x18] sm:$0xff]  ;;  %v675_v32 = vld [vmem:[#allocation7 + $0xa8] sm:$0xff]  ;;  %v688_v34 = vld [vmem:[#allocation7 + $0x110] sm:$0xff] }
  0x7f   : > { %1393 = vmatpush3.bf16.msra.mxu1 %v1390_v49  ;;  %v426_v29 = vld [vmem:[%s1855_s9 + $0xe] sm:$0x3]  ;;  %v422_v36 = vld [vmem:[%s1855_s9 + $0xc] sm:$0x3]  ;;  %v1412_v37 = vpack.c.bf16 %v657_v28, %v656_v27  ;;  %v1414_v38 = vpack.c.bf16 %v675_v32, %v674_v31  ;;  %v658_v40 = vld [vmem:[#allocation7 + $0x20] sm:$0xff]  ;;  %v635_v28 = vlaneseq  ;;  %v638_v31 = vstv %s1103_s21 }
  0x80   : > { %1395 = vmatprep.subr.bf16.mxu1 %v1394_v60  ;;  %v689_v35 = vld [vmem:[#allocation7 + $0x118] sm:$0xff]  ;;  %v659_v41 = vld [vmem:[#allocation7 + $0x28] sm:$0xff]  ;;  %v690_v42 = vld [vmem:[#allocation7 + $0x120] sm:$0xff] }
  0x81   : > { %1365 = vmatpush3.bf16.msra.mxu0 %v1364_v61  ;;  %v1442_v39 = vpack.c.bf16 %v689_v35, %v688_v34  ;;  %v1416_v43 = vpack.c.bf16 %v659_v41, %v658_v40  ;;  %v691_v44 = vld [vmem:[#allocation7 + $0x128] sm:$0xff]  ;;  %v676_v46 = vld [vmem:[#allocation7 + $0xb0] sm:$0xff]  ;;  %v677_v47 = vld [vmem:[#allocation7 + $0xb8] sm:$0xff] }
  0x82   : > { %1367 = vmatprep.subr.bf16.mxu0 %v1366_v0  ;;  %v1445_v45 = vpack.c.bf16 %v691_v44, %v690_v42  ;;  %v1418_v48 = vpack.c.bf16 %v677_v47, %v676_v46  ;;  %v660_v49 = vld [vmem:[#allocation7 + $0x30] sm:$0xff]  ;;  %v661_v50 = vld [vmem:[#allocation7 + $0x38] sm:$0xff]  ;;  %v678_v55 = vld [vmem:[#allocation7 + $0xc0] sm:$0xff] }
  0x83   : > { %1397 = vmatpush3.bf16.msra.mxu1 %v1394_v60  ;;  %v692_v51 = vld [vmem:[#allocation7 + $0x130] sm:$0xff]  ;;  %v1420_v52 = vpack.c.bf16 %v661_v50, %v660_v49  ;;  %v693_v53 = vld [vmem:[#allocation7 + $0x138] sm:$0xff]  ;;  %v679_v56 = vld [vmem:[#allocation7 + $0xc8] sm:$0xff] }
  0x84   : > { %1399 = vmatprep.subr.bf16.mxu1 %v1398_v5  ;;  %v1448_v54 = vpack.c.bf16 %v693_v53, %v692_v51  ;;  %v1422_v57 = vpack.c.bf16 %v679_v56, %v678_v55  ;;  %v662_v58 = vld [vmem:[#allocation7 + $0x40] sm:$0xff]  ;;  %v663_v59 = vld [vmem:[#allocation7 + $0x48] sm:$0xff]  ;;  %v680_v0 = vld [vmem:[#allocation7 + $0xd0] sm:$0xff] }
  0x85   : > { %1369 = vmatpush3.bf16.msra.mxu0 %v1368_v6  ;;  %v694_v60 = vld [vmem:[#allocation7 + $0x140] sm:$0xff]  ;;  %v1424_v61 = vpack.c.bf16 %v663_v59, %v662_v58  ;;  %v695_v62 = vld [vmem:[#allocation7 + $0x148] sm:$0xff]  ;;  %v681_v1 = vld [vmem:[#allocation7 + $0xd8] sm:$0xff] }
  0x86   : > { %1371 = vmatprep.subr.bf16.mxu0 %v1370_v9  ;;  %v1451_v63 = vpack.c.bf16 %v695_v62, %v694_v60  ;;  %v1426_v2 = vpack.c.bf16 %v681_v1, %v680_v0  ;;  %v664_v3 = vld [vmem:[#allocation7 + $0x50] sm:$0xff]  ;;  %v665_v4 = vld [vmem:[#allocation7 + $0x58] sm:$0xff]  ;;  %v682_v9 = vld [vmem:[#allocation7 + $0xe0] sm:$0xff] }
  0x87   : > { %1401 = vmatpush3.bf16.msra.mxu1 %v1398_v5  ;;  %v696_v5 = vld [vmem:[#allocation7 + $0x150] sm:$0xff]  ;;  %v1428_v6 = vpack.c.bf16 %v665_v4, %v664_v3  ;;  %v697_v7 = vld [vmem:[#allocation7 + $0x158] sm:$0xff]  ;;  %v683_v10 = vld [vmem:[#allocation7 + $0xe8] sm:$0xff] }
  0x88   : > { %1403 = vmatprep.subr.bf16.mxu1 %v1402_v14  ;;  %v1454_v8 = vpack.c.bf16 %v697_v7, %v696_v5  ;;  %v1430_v11 = vpack.c.bf16 %v683_v10, %v682_v9  ;;  %v666_v12 = vld [vmem:[#allocation7 + $0x60] sm:$0xff]  ;;  %v667_v13 = vld [vmem:[#allocation7 + $0x68] sm:$0xff]  ;;  %v684_v18 = vld [vmem:[#allocation7 + $0xf0] sm:$0xff] }
  0x89   : > { %1373 = vmatpush3.bf16.msra.mxu0 %v1372_v15  ;;  %v1432_v15 = vpack.c.bf16 %v667_v13, %v666_v12  ;;  %v685_v19 = vld [vmem:[#allocation7 + $0xf8] sm:$0xff]  ;;  %v668_v20 = vld [vmem:[#allocation7 + $0x70] sm:$0xff]  ;;  %v853_v55 = vld [vmem:[%s1964_s5 + $0x10] sm:$0xff] }
  0x8a   : > { %1407 = vmatprep.subr.bf16.mxu0 %v1406_v16  ;;  %v699_v16 = vld [vmem:[#allocation7 + $0x168] sm:$0xff]  ;;  %v1434_v21 = vpack.c.bf16 %v685_v19, %v684_v18  ;;  %v669_v22 = vld [vmem:[#allocation7 + $0x78] sm:$0xff]  ;;  %v1102_v34 = vld [vmem:[%s1961_s2] ss:$0 sm:$0xff] }
  0x8b   : > { %1405 = vmatpush3.bf16.msra.mxu1 %v1402_v14  ;;  %v698_v14 = vld [vmem:[#allocation7 + $0x160] sm:$0xff]  ;;  %v852_v53 = vld [vmem:[%s1964_s5 + $0x8] sm:$0xff]  ;;  %v854_v58 = vld [vmem:[%s1964_s5 + $0x18] sm:$0xff] }
  0x8c   : > { %547 = vmatmul.mubr.f32.vlgmr.msra.gmra.mrb[0].mxu0 %v421_v23  ;;  %1438 = vmatprep.subr.bf16.mxu1 %v1677_v33  ;;  %v1457_v17 = vpack.c.bf16 %v699_v16, %v698_v14  ;;  %v700_v23 = vld [vmem:[#allocation7 + $0x170] sm:$0xff]  ;;  %v1466_v59 = vpack.c.bf16 %v854_v58, %v853_v55  ;;  %v858_v0 = vld [vmem:[%s1964_s5 + $0x38] sm:$0xff]  ;;  %v860_v3 = vld [vmem:[%s1964_s5 + $0x48] sm:$0xff] }
  0x8d   : > { %551 = vmatprep.mubr.f32.mxu0 %v424_v25  ;;  %1409 = vmatpush3.bf16.msra.mxu0 %v1408_v24  ;;  %v701_v24 = vld [vmem:[#allocation7 + $0x178] sm:$0xff]  ;;  %v1679_v25 = vmov 0.0   ;;  %v855_v60 = vld [vmem:[%s1964_s5 + $0x20] sm:$0xff]  ;;  %v861_v5 = vld [vmem:[%s1964_s5 + $0x50] sm:$0xff] }
  0x8e   : > { %1270 = vmatmul.mubr.f32.vlgmr.msra.gmra.mrb[0].mxu1 %v426_v29  ;;  %1411 = vmatprep.subr.bf16.mxu0 %v1410_v26  ;;  %v1436_v26 = vpack.c.bf16 %v669_v22, %v668_v20  ;;  %v1460_v27 = vpack.c.bf16 %v701_v24, %v700_v23  ;;  %v636_v29 = vshrl.u32 %v635_v28, 7  ;;  %v864_v9 = vld [vmem:[%s1964_s5 + $0x68] sm:$0xff]  ;;  %v866_v12 = vld [vmem:[%s1964_s5 + $0x78] sm:$0xff]  ;;  %v1104_v18 = vld [vmem:[%s1963_s4] ss:$0 sm:$0xff] }
  0x8f   : > { %1440 = vmatpush3.bf16.msra.mxu1 %v1439_v30  ;;  %1304 = vmatprep.mubr.msk.f32.mxu1 %vm1678_vm0, %v1679_v25  ;;  %v850_v14 = vld [vmem:[%s1855_s9 + $0x8] sm:$0xff]  ;;  %v1105_v23 = vld [vmem:[%s1965_s6] ss:$0 sm:$0xff] }
  0x90   : > { %552 = vmatmul.mubr.f32.gmra.mrb[2].mxu0 %v422_v36  ;;  %1441 = vmatprep.subr.bf16.mxu1 %v1677_v33 }
  0x91   : > { %1413 = vmatpush3.bf16.msra.mxu0 %v1412_v37 }
  0x92   : > { %1415 = vmatprep.subr.bf16.mxu0 %v1414_v38  ;;  %v637_v38 = vadd.s32 8, %v636_v29 }
  0x93   : > { %1443 = vmatpush3.bf16.msra.mxu1 %v1442_v39  ;;  %v639_v39 = vadd.s32 %v638_v31, %v636_v29 }
  0x94   : > { %1444 = vmatprep.subr.bf16.mxu1 %v1677_v33 }
  0x95   : > { %1417 = vmatpush3.bf16.msra.mxu0 %v1416_v43  ;;  %vm641_vm1 = vcmp.ge.s32.totalorder %v639_v39, 0 }
  0x96   : > { %1419 = vmatprep.subr.bf16.mxu0 %v1418_v48 }
  0x97   : > { %1446 = vmatpush3.bf16.msra.mxu1 %v1445_v45  ;;  %v640_v45 = vadd.s32 %v638_v31, %v637_v38 }
  0x98   : > { %1447 = vmatprep.subr.bf16.mxu1 %v1677_v33 }
  0x99   : > { %1421 = vmatpush3.bf16.msra.mxu0 %v1420_v52  ;;  %vm642_vm2 = vcmp.ge.s32.totalorder %v640_v45, 0  ;;  %v851_v52 = vld [vmem:[%s1964_s5] sm:$0xff] }
  0x9a   : > { %1423 = vmatprep.subr.bf16.mxu0 %v1422_v57 }
  0x9b   : > { %1449 = vmatpush3.bf16.msra.mxu1 %v1448_v54  ;;  %v1463_v54 = vpack.c.bf16 %v852_v53, %v851_v52 }
  0x9c   : > { %1450 = vmatprep.subr.bf16.mxu1 %v1677_v33 }
  0x9d   : > { %1425 = vmatpush3.bf16.msra.mxu0 %v1424_v61  ;;  %v856_v61 = vld [vmem:[%s1964_s5 + $0x28] sm:$0xff] }
  0x9e   : > { %1427 = vmatprep.subr.bf16.mxu0 %v1426_v2  ;;  %v1469_v62 = vpack.c.bf16 %v856_v61, %v855_v60  ;;  %v859_v2 = vld [vmem:[%s1964_s5 + $0x40] sm:$0xff] }
  0x9f   : > { %1452 = vmatpush3.bf16.msra.mxu1 %v1451_v63  ;;  %v857_v63 = vld [vmem:[%s1964_s5 + $0x30] sm:$0xff]  ;;  %v1475_v4 = vpack.c.bf16 %v860_v3, %v859_v2 }
  0xa0   : > { %1453 = vmatprep.subr.bf16.mxu1 %v1677_v33  ;;  %v1472_v1 = vpack.c.bf16 %v858_v0, %v857_v63 }
  0xa1   : > { %1429 = vmatpush3.bf16.msra.mxu0 %v1428_v6  ;;  %v862_v6 = vld [vmem:[%s1964_s5 + $0x58] sm:$0xff] }
  0xa2   : > { %1431 = vmatprep.subr.bf16.mxu0 %v1430_v11  ;;  %v1478_v7 = vpack.c.bf16 %v862_v6, %v861_v5  ;;  %v865_v11 = vld [vmem:[%s1964_s5 + $0x70] sm:$0xff] }
  0xa3   : > { %1455 = vmatpush3.bf16.msra.mxu1 %v1454_v8  ;;  %v863_v8 = vld [vmem:[%s1964_s5 + $0x60] sm:$0xff]  ;;  %v1484_v13 = vpack.c.bf16 %v866_v12, %v865_v11 }
  0xa4   : > { %1456 = vmatprep.subr.bf16.mxu1 %v1677_v33  ;;  %v1481_v10 = vpack.c.bf16 %v864_v9, %v863_v8 }
  0xa5   : > { %1433 = vmatpush3.bf16.msra.mxu0 %v1432_v15 }
  0xa6   : > { %1435 = vmatprep.subr.bf16.mxu0 %v1434_v21 }
  0xa7   : > { %1458 = vmatpush3.bf16.msra.mxu1 %v1457_v17 }
  0xa8   : > { %1459 = vmatprep.subr.bf16.mxu1 %v1677_v33 }
  0xa9   : > { %1437 = vmatpush3.bf16.msra.mxu0 %v1436_v26 }
  0xaa   : > { %1462 = vmatprep.subr.bf16.mxu0 %v1677_v33 }
  0xab   : > { %1461 = vmatpush3.bf16.msra.mxu1 %v1460_v27 }
 0x15f   : > { %v1144_v30 = vpop.f32.mrb[0].mxu0 }
 0x160   : > { %v1145_v32 = vpop.f32.mrb[1].mxu0 }
 0x161   : > { %v1146_v35 = vadd.f32 %v1145_v32, %v1144_v30  ;;  %v1271_v36 = vpop.f32.mrb[0].mxu1 }
 0x162   : > { %v623_v37 = vpop.f32.mrb[1].mxu1 }
 0x163   : > { %v1147_v40 = vpop.f32.mrb[2].mxu0  ;;  %v549_v41 = vadd.f32 %v1146_v35, %v1102_v34 }
 0x164   : > { %v1148_v42 = vpop.f32.mrb[3].mxu0 }
 0x165   : > { %v1149_v43 = vadd.f32 %v1148_v42, %v1147_v40  ;;  %v624_v44 = vadd.f32 %v623_v37, %v549_v41 }
 0x167   : > { %v554_v46 = vadd.f32 %v1149_v43, %v1102_v34  ;;  %v632_v47 = vmax.f32 %v624_v44, 0.0 }
 0x169   : > { %v629_v48 = vadd.f32 %v1271_v36, %v554_v46  ;;  %v647_v49 = vsel %vm641_vm1, %v632_v47, 0.0 }
 0x16a   : > { %649 = vst [vmem:[#allocation3] sm:$0xff] %v647_v49 }
 0x16b   : > { %v633_v50 = vmax.f32 %v629_v48, 0.0 }
 0x16d   : > { %v648_v51 = vsel %vm642_vm2, %v633_v50, 0.0 }
 0x16e   : > { %650 = vst [vmem:[#allocation3 + $0x8] sm:$0x3] %v648_v51 }
 0x175   : > { %v652_v56 = vld [vmem:[#allocation3 + $0x1] sm:$0xff] }
 0x176   : > { %v653_v57 = vld [vmem:[#allocation3 + $0x2] sm:$0xff]  ;;  %773 = vmatprep.mubr.f32.mxu0 %v652_v56 }
 0x177   : > { %1305 = vmatmul.mubr.f32.vlgmr.msra.gmra.mrb[2].mxu1 %v653_v57  ;;  %1559 = vmatmul.mubr.msk.f32.vlgmr.msra.gmra.mrb[4].mxu0 %vm641_vm1, %v632_v47 }
 0x178   : > { %1464 = vmatpush3.bf16.msra.mxu0 %v1463_v54  ;;  %1339 = vmatprep.mubr.msk.f32.mxu0 %vm1678_vm0, %v1679_v25 }
 0x179   : > { %1465 = vmatprep.subr.bf16.mxu0 %v1677_v33 }
 0x17c   : > { %1467 = vmatpush3.bf16.msra.mxu0 %v1466_v59 }
 0x17d   : > { %1468 = vmatprep.subr.bf16.mxu0 %v1677_v33 }
 0x180   : > { %1470 = vmatpush3.bf16.msra.mxu0 %v1469_v62 }
 0x181   : > { %1471 = vmatprep.subr.bf16.mxu0 %v1677_v33 }
 0x184   : > { %1473 = vmatpush3.bf16.msra.mxu0 %v1472_v1 }
 0x185   : > { %1474 = vmatprep.subr.bf16.mxu0 %v1677_v33 }
 0x188   : > { %1476 = vmatpush3.bf16.msra.mxu0 %v1475_v4 }
 0x189   : > { %1477 = vmatprep.subr.bf16.mxu0 %v1677_v33 }
 0x18c   : > { %1479 = vmatpush3.bf16.msra.mxu0 %v1478_v7 }
 0x18d   : > { %1480 = vmatprep.subr.bf16.mxu0 %v1677_v33 }
 0x190   : > { %1482 = vmatpush3.bf16.msra.mxu0 %v1481_v10 }
 0x191   : > { %1483 = vmatprep.subr.bf16.mxu0 %v1677_v33 }
 0x194   : > { %1485 = vmatpush3.bf16.msra.mxu0 %v1484_v13 }
 0x197   : > { %1340 = vmatmul.mubr.f32.vlgmr.msra.gmra.mrb[6].mxu0 %v850_v14 }
 0x24a   : > { %v845_v15 = vpop.f32.mrb[2].mxu1  ;;  %v1200_v16 = vpop.f32.mrb[4].mxu0 }
 0x24b   : > { %v1306_v17 = vpop.f32.mrb[3].mxu1  ;;  %v1201_v19 = vpop.f32.mrb[5].mxu0 }
 0x24c   : > { %v1202_v20 = vadd.f32 %v1201_v19, %v1200_v16 }
 0x24e   : > { %v776_v21 = vadd.f32 %v1202_v20, %v1104_v18 }
 0x250   : > { %v846_v22 = vadd.f32 %v845_v15, %v776_v21 }
 0x252   : > { %v849_v24 = vmax.f32 %v846_v22, 0.0 }
 0x26a   : > { %v940_v33 = vpop.f32.mrb[6].mxu0 }
 0x26b   : > { %v941_v25 = vadd.f32 %v1105_v23, %v940_v33  ;;  %v1341_v26 = vpop.f32.mrb[7].mxu0 }
 0x26d   : > { %v944_v27 = vadd.f32 %v941_v25, %v849_v24 }
 0x26f   : > { %v945_v28 = vmax.f32 %v944_v27, 0.0 }
 0x271   : > { %946 = vst [vmem:[%s1834_s19] sm:$0xff] %v945_v28 }
 0x272 PF: > { %s19_s28 = sadd.s32 1, %s1670_s28   ;;  %s1976_s9 = sld [smem:[#allocation15_spill]] }
 0x273   : > { %p16_p1 = scmp.ge.s32.totalorder %s19_s28, 6   ;;  %s1977_s24 = smov %s1662_s26 }
 0x274   : > { %s1978_s25 = smov %s1666_s27  ;;  %s1979_s26 = smov %s1982_s30 }
 0x275   :  { %18 = sbr.rel (!%p16_p1) target bundleno = 4 (0x4), region = 188 }
 0x278   : > { %s1980_s27 = smov %s1976_s9 }
 0x27c   :  { %974 = vsyncpa [#allocation6], 1 }
 0x27d   :  { %976 = vsyncpa [#allocation6 + $0x1], 1 }
 0x27e   :  { %977 = vsyncpa [#allocation8], 1 }
 0x27f   :  { %978 = vsyncmov [#allocation4] }
 0x282   :  { %s979_s19 = vpop.sfrf %978 }
 0x283   :  { %p1108_p2 = scmp.ne.s32.totalorder %s979_s19, 0 }
 0x285   :  { %983 = shalt.err (%p1108_p2)  }
 0x286   :  { %985 = vsyncmov [#allocation4 + $0x1] }
 0x289   :  { %s986_s23 = vpop.sfrf %985 }
 0x28a   :  { %p1109_p4 = scmp.ne.s32.totalorder %s986_s23, 0 }
 0x28c   :  { %990 = shalt.err (%p1109_p4)  }

// kernel: tcn_forward.3
= control target key start
LH: loop header
LB: loop body
LE: loop exit
PB: predicated region body
PF: predicated region fallthrough
CT: control target
= control target key end

     0   :  { %s1338_s18 = smov 0   ;;  %s1340_s19 = smov 0   ;;  %s1733_s0 = inlined_call_operand.vmem [shape: f32[2,16,128], index: 0, kind: input, shape index: {}]   ;;  %s1734_s1 = inlined_call_operand.vmem [shape: f32[384,128], index: 1, kind: input, shape index: {}]   ;;  %s1735_s2 = inlined_call_operand.vmem [shape: f32[1,128], index: 2, kind: input, shape index: {}]   ;;  %s1736_s3 = inlined_call_operand.vmem [shape: f32[384,128], index: 3, kind: input, shape index: {}]   ;;  %s1737_s4 = inlined_call_operand.vmem [shape: f32[1,128], index: 4, kind: input, shape index: {}]   ;;  %s1738_s5 = inlined_call_operand.vmem [shape: f32[2,16,128], index: 5, kind: output, shape index: {}]  }
   0x1   :  { %s1342_s20 = smov 0   ;;  %s1344_s21 = smov 0  }
   0x2   :  { %s1346_s22 = smov 0  }
   0x3 LB: > { %s24_s23 = sadd.s32 1, %s1294_s20  ;;  %s27_s24 = sadd.s32 1, %s1298_s21  ;;  %s1302_s22 = sphi %s1346_s22, %s15_s22   ;;  %s1298_s21 = sphi %s1344_s21, %s1742_s21   ;;  %s1294_s20 = sphi %s1342_s20, %s1741_s20   ;;  %s1290_s19 = sphi %s1340_s19, %s1740_s19   ;;  %s1286_s18 = sphi %s1338_s18, %s1739_s18  }
   0x4   : > { %p25_p0 = scmp.ge.s32.totalorder %s24_s23, 2  ;;  %p881_p1 = scmp.ge.s32.totalorder %s1302_s22, 1 }
   0x5   : > { %p167_p2 = scmp.lt.s32.totalorder %s1302_s22, 5 }
   0x6   : > { %s1744_s23 = smov (%p25_p0, %s24_s23), 0  ;;  %s1746_s24 = smov (!%p25_p0, %s27_s24), %s1298_s21 }
   0x7   : > { %p168_p3 = pnand %p881_p1, %p167_p2  ;;  %p29_p4 = scmp.ge.s32.totalorder %s1746_s24, 2 }
   0x8   : > { %p191_p5 = scmp.lt.s32.totalorder (!%p168_p3), %s1290_s19, 1  ;;  %p193_p6 = scmp.lt.s32.totalorder (!%p168_p3), %s1286_s18, 1 }
   0x9   : > { %s1748_s24 = smov (%p29_p4, %s1746_s24), 0  ;;  %171 = sbr.rel (%p168_p3) target bundleno = 543 (0x21f), region = 36 }
   0xa   : > { %s884_s25 = sshll.u32 (!%p168_p3), %s1286_s18, 3  ;;  %p200_p7 = scmp.lt.s32.totalorder (!%p168_p3), %s1286_s18, 0 }
   0xb   : > { %s201_s29 = ssub.s32 (!%p168_p3), 0, %s1286_s18  ;;  %p888_p9 = scmp.ne.s32.totalorder (!%p168_p3), %s1286_s18, 0 }
   0xc   : > { %s885_s6 = smin.u32 (!%p168_p3), %s1286_s18, %s201_s29 }
   0xd   : > { %s203_s8 = sand.u32 (!%p168_p3), 1, %s885_s6  }
   0xe   : > { %s204_s12 = ssub.s32 (!%p168_p3), 0, %s203_s8 }
  0x10   : > { %s192_s26 = scalar_select %p191_p5, %s1290_s19, 1 }
  0x11   : > { %s194_s27 = scalar_select %p193_p6, %s1286_s18, 1 }
  0x12   : > { %s882_s28 = sshll.u32 %s192_s26, 1  ;;  %s1750_s12 = smov (!%p200_p7, %s204_s12), %s203_s8  ;;  %v1304_v0 = vmov (!%p888_p9), 0.0  }
  0x13   : > { %s196_s30 = sadd.s32 %s882_s28, %s194_s27  ;;  %p887_p8 = scmp.lt.s32.totalorder %s1750_s12, 0  ;;  %216 = vst [vmem:[#allocation2] sm:$0xff] (!%p888_p9), %v1304_v0 }
  0x14   : > { %s883_s7 = sshll.u32 %s196_s30, 3  ;;  %s210_s13 = sadd.s32 2, %s1750_s12 }
  0x15   : > { %s1383_s11 = scalar_lea.vmem %s1738_s5, %s883_s7  ;;  %s1752_s13 = smov (!%p887_p8, %s210_s13), %s1750_s12 }
  0x16   : > { %215 = sbr.rel (%p888_p9) target bundleno = 30 (0x1e), region = 40  ;;  %s889_s14 = sshll.u32 (!%p888_p9), %s1290_s19, 4 }
  0x17   : > { %s218_s17 = scalar_lea.vmem (!%p888_p9), %s1733_s0, %s889_s14 }
  0x18   : > { %v252_v1 = vld [vmem:[%s218_s17] sm:$0xff] (!%p888_p9) }
  0x19   : > { %253 = vst [vmem:[#allocation2 + $0x8] sm:$0xff] (!%p888_p9), %v252_v1 }
  0x1d   : > { %261 = vsyncadd [#allocation4], 128 }
  0x1e PF: > { %s262_s26 = sadd.s32 1, %s1286_s18 }
  0x1f   : > { %p890_p10 = scmp.ge.s32.totalorder %s262_s26, 2 }
  0x20   : > { %s267_s27 = ssub.s32 (!%p890_p10), 1, %s1752_s13  ;;  %s906_s28 = sadd.s32 (!%p890_p10), 8, %s884_s25 }
  0x21   : > { %266 = sbr.rel (%p890_p10) target bundleno = 41 (0x29), region = 78  ;;  %s892_s29 = sadd.s32 (!%p890_p10), 4294967288, %s906_s28 }
  0x22   : > { %s893_s30 = sshll.u32 (!%p890_p10), %s1290_s19, 4  ;;  %s894_s7 = sshll.u32 (!%p890_p10), %s267_s27, 4 }
  0x23   : > { %s271_s6 = sadd.s32 (!%p890_p10), %s893_s30, %s892_s29  ;;  %s274_s12 = scalar_lea.vmem (!%p890_p10), [#allocation2], %s894_s7 }
  0x24   : > { %s272_s10 = scalar_lea.vmem (!%p890_p10), %s1733_s0, %s271_s6  ;;  %s275_s14 = scalar_lea.sflag (!%p890_p10), [#allocation4], %s267_s27 }
  0x25   : > { %v308_v2 = vld [vmem:[%s272_s10] sm:$0xff] (!%p890_p10)  ;;  %v310_v3 = vld [vmem:[%s272_s10 + $0x8] sm:$0xff] (!%p890_p10) }
  0x26   : > { %309 = vst [vmem:[%s274_s12] sm:$0xff] (!%p890_p10), %v308_v2  ;;  %311 = vst [vmem:[%s274_s12 + $0x8] sm:$0xff] (!%p890_p10), %v310_v3 }
  0x28   : > { %319 = vsyncadd %s275_s14, 256 }
  0x29 PF: > { %p1209_p11 = scmp.eq.s32.totalorder %s1286_s18, 0 }
  0x2b   : > { %1277 = dma.done.wait (%p1209_p11), [#allocation4], 128 }
  0x2c   : > { %1279 = vsyncadd (%p1209_p11), [#allocation4], 4294967168  ;;  %p1210_p12 = scmp.gt.s32.totalorder %s1286_s18, 0  ;;  %s331_s19 = scalar_lea.sflag [#allocation4], %s1752_s13 }
  0x2e   : > { %1281 = dma.done.wait (%p1210_p12), %s331_s19, 256 }
  0x2f   : > { %1283 = vsyncadd (%p1210_p12), %s331_s19, 4294967040  ;;  %v359_v4 = vld [vmem:[%s1734_s1 + $0x80] sm:$0xff]  ;;  %v360_v5 = vld [vmem:[%s1734_s1 + $0x88] sm:$0xff]  ;;  %s897_s15 = sshll.u32 %s1752_s13, 4  ;;  %vm1306_vm0 = vmmov 0   ;;  %s899_s17 = sadd.s32 4294967292, %s884_s25 }
  0x30   : > { %v343_v6 = vld [vmem:[%s1734_s1] sm:$0xff]  ;;  %v1085_v7 = vpack.c.bf16 %v360_v5, %v359_v4  ;;  %v344_v8 = vld [vmem:[%s1734_s1 + $0x8] sm:$0xff]  ;;  %v361_v9 = vld [vmem:[%s1734_s1 + $0x90] sm:$0xff]  ;;  %s1500_s16 = scalar_lea.vmem [#allocation2], %s897_s15 }
  0x31   : > { %v362_v10 = vld [vmem:[%s1734_s1 + $0x98] sm:$0xff]  ;;  %v1087_v11 = vpack.c.bf16 %v344_v8, %v343_v6  ;;  %v375_v13 = vld [vmem:[%s1734_s1 + $0x100] sm:$0xff]  ;;  %v376_v14 = vld [vmem:[%s1734_s1 + $0x108] sm:$0xff] }
  0x32   : > { %v1089_v12 = vpack.c.bf16 %v362_v10, %v361_v9  ;;  %v345_v15 = vld [vmem:[%s1734_s1 + $0x10] sm:$0xff]  ;;  %1086 = vmatprep.subr.bf16.mxu0 %v1085_v7  ;;  %v1117_v16 = vpack.c.bf16 %v376_v14, %v375_v13  ;;  %v346_v17 = vld [vmem:[%s1734_s1 + $0x18] sm:$0xff]  ;;  %v363_v18 = vld [vmem:[%s1734_s1 + $0xa0] sm:$0xff] }
  0x33   : > { %v364_v19 = vld [vmem:[%s1734_s1 + $0xa8] sm:$0xff]  ;;  %1088 = vmatpush3.bf16.msra.mxu0 %v1087_v11  ;;  %v1091_v20 = vpack.c.bf16 %v346_v17, %v345_v15  ;;  %v377_v21 = vld [vmem:[%s1734_s1 + $0x110] sm:$0xff]  ;;  %v378_v22 = vld [vmem:[%s1734_s1 + $0x118] sm:$0xff] }
  0x34   : > { %1090 = vmatprep.subr.bf16.mxu0 %v1089_v12  ;;  %1118 = vmatprep.subr.bf16.mxu1 %v1117_v16  ;;  %v1093_v23 = vpack.c.bf16 %v364_v19, %v363_v18  ;;  %v1121_v24 = vpack.c.bf16 %v378_v22, %v377_v21  ;;  %v347_v25 = vld [vmem:[%s1734_s1 + $0x20] sm:$0xff]  ;;  %v348_v26 = vld [vmem:[%s1734_s1 + $0x28] sm:$0xff]  ;;  %v365_v27 = vld [vmem:[%s1734_s1 + $0xb0] sm:$0xff] }
  0x35   : > { %1120 = vmatpush3.bf16.msra.mxu1 %v1117_v16  ;;  %v366_v28 = vld [vmem:[%s1734_s1 + $0xb8] sm:$0xff]  ;;  %v379_v29 = vld [vmem:[%s1734_s1 + $0x120] sm:$0xff]  ;;  %v380_v30 = vld [vmem:[%s1734_s1 + $0x128] sm:$0xff]  ;;  %v1095_v32 = vpack.c.bf16 %v348_v26, %v347_v25 }
  0x36   : > { %1122 = vmatprep.subr.bf16.mxu1 %v1121_v24  ;;  %v1125_v31 = vpack.c.bf16 %v380_v30, %v379_v29  ;;  %v381_v33 = vld [vmem:[%s1734_s1 + $0x130] sm:$0xff]  ;;  %v382_v34 = vld [vmem:[%s1734_s1 + $0x138] sm:$0xff]  ;;  %v1097_v35 = vpack.c.bf16 %v366_v28, %v365_v27  ;;  %v367_v38 = vld [vmem:[%s1734_s1 + $0xc0] sm:$0xff] }
  0x37   : > { %1092 = vmatpush3.bf16.msra.mxu0 %v1091_v20  ;;  %v349_v36 = vld [vmem:[%s1734_s1 + $0x30] sm:$0xff]  ;;  %v350_v37 = vld [vmem:[%s1734_s1 + $0x38] sm:$0xff]  ;;  %v368_v39 = vld [vmem:[%s1734_s1 + $0xc8] sm:$0xff]  ;;  %v1129_v40 = vpack.c.bf16 %v382_v34, %v381_v33 }
  0x38   : > { %1094 = vmatprep.subr.bf16.mxu0 %v1093_v23  ;;  %v1099_v41 = vpack.c.bf16 %v350_v37, %v349_v36  ;;  %v383_v42 = vld [vmem:[%s1734_s1 + $0x140] sm:$0xff]  ;;  %v384_v43 = vld [vmem:[%s1734_s1 + $0x148] sm:$0xff]  ;;  %v1101_v44 = vpack.c.bf16 %v368_v39, %v367_v38  ;;  %v369_v47 = vld [vmem:[%s1734_s1 + $0xd0] sm:$0xff] }
  0x39   : > { %1124 = vmatpush3.bf16.msra.mxu1 %v1121_v24  ;;  %v351_v45 = vld [vmem:[%s1734_s1 + $0x40] sm:$0xff]  ;;  %v352_v46 = vld [vmem:[%s1734_s1 + $0x48] sm:$0xff]  ;;  %v370_v48 = vld [vmem:[%s1734_s1 + $0xd8] sm:$0xff]  ;;  %v1133_v49 = vpack.c.bf16 %v384_v43, %v383_v42 }
  0x3a   : > { %1126 = vmatprep.subr.bf16.mxu1 %v1125_v31  ;;  %v339_v50 = vld [vmem:[%s1500_s16 + $0x2] sm:$0xff]  ;;  %v1103_v51 = vpack.c.bf16 %v352_v46, %v351_v45  ;;  %v385_v52 = vld [vmem:[%s1734_s1 + $0x150] sm:$0xff]  ;;  %v386_v53 = vld [vmem:[%s1734_s1 + $0x158] sm:$0xff]  ;;  %v1105_v54 = vpack.c.bf16 %v370_v48, %v369_v47 }
  0x3b   : > { %1096 = vmatpush3.bf16.msra.mxu0 %v1095_v32  ;;  %462 = vmatprep.mubr.f32.mxu0 %v339_v50  ;;  %v353_v55 = vld [vmem:[%s1734_s1 + $0x50] sm:$0xff]  ;;  %v354_v56 = vld [vmem:[%s1734_s1 + $0x58] sm:$0xff]  ;;  %v341_v57 = vld [vmem:[%s1500_s16 + $0x4] sm:$0xff]  ;;  %v1137_v60 = vpack.c.bf16 %v386_v53, %v385_v52 }
  0x3c   : > { %1098 = vmatprep.subr.bf16.mxu0 %v1097_v35  ;;  %v371_v58 = vld [vmem:[%s1734_s1 + $0xe0] sm:$0xff]  ;;  %v372_v59 = vld [vmem:[%s1734_s1 + $0xe8] sm:$0xff]  ;;  %1047 = vmatprep.mubr.f32.mxu1 %v341_v57  ;;  %v1107_v61 = vpack.c.bf16 %v354_v56, %v353_v55  ;;  %v373_v3 = vld [vmem:[%s1734_s1 + $0xf0] sm:$0xff] }
  0x3d   : > { %1128 = vmatpush3.bf16.msra.mxu1 %v1125_v31  ;;  %v387_v62 = vld [vmem:[%s1734_s1 + $0x160] sm:$0xff]  ;;  %v388_v63 = vld [vmem:[%s1734_s1 + $0x168] sm:$0xff]  ;;  %v1109_v0 = vpack.c.bf16 %v372_v59, %v371_v58  ;;  %v374_v4 = vld [vmem:[%s1734_s1 + $0xf8] sm:$0xff]  ;;  %v1305_v31 = vmov 0.0|0.0  }
  0x3e   : > { %1130 = vmatprep.subr.bf16.mxu1 %v1129_v40  ;;  %v355_v1 = vld [vmem:[%s1734_s1 + $0x60] sm:$0xff]  ;;  %v356_v2 = vld [vmem:[%s1734_s1 + $0x68] sm:$0xff]  ;;  %v1141_v5 = vpack.c.bf16 %v388_v63, %v387_v62  ;;  %v389_v7 = vld [vmem:[%s1734_s1 + $0x170] sm:$0xff]  ;;  %v1113_v9 = vpack.c.bf16 %v374_v4, %v373_v3 }
  0x3f   : > { %1100 = vmatpush3.bf16.msra.mxu0 %v1099_v41  ;;  %v1111_v6 = vpack.c.bf16 %v356_v2, %v355_v1  ;;  %v390_v8 = vld [vmem:[%s1734_s1 + $0x178] sm:$0xff]  ;;  %v357_v10 = vld [vmem:[%s1734_s1 + $0x70] sm:$0xff]  ;;  %v586_v12 = vld [vmem:[%s1736_s3 + $0x80] sm:$0xff] }
  0x40   : > { %1102 = vmatprep.subr.bf16.mxu0 %v1101_v44  ;;  %v358_v11 = vld [vmem:[%s1734_s1 + $0x78] sm:$0xff]  ;;  %v587_v13 = vld [vmem:[%s1736_s3 + $0x88] sm:$0xff]  ;;  %v1145_v14 = vpack.c.bf16 %v390_v8, %v389_v7  ;;  %v570_v17 = vld [vmem:[%s1736_s3] sm:$0xff] }
  0x41   : > { %1132 = vmatpush3.bf16.msra.mxu1 %v1129_v40  ;;  %v1115_v15 = vpack.c.bf16 %v358_v11, %v357_v10  ;;  %v1149_v16 = vpack.c.bf16 %v587_v13, %v586_v12  ;;  %v571_v18 = vld [vmem:[%s1736_s3 + $0x8] sm:$0xff]  ;;  %v588_v19 = vld [vmem:[%s1736_s3 + $0x90] sm:$0xff]  ;;  %v589_v20 = vld [vmem:[%s1736_s3 + $0x98] sm:$0xff] }
  0x42   : > { %1134 = vmatprep.subr.bf16.mxu1 %v1133_v49  ;;  %v602_v21 = vld [vmem:[%s1736_s3 + $0x100] sm:$0xff]  ;;  %v603_v22 = vld [vmem:[%s1736_s3 + $0x108] sm:$0xff]  ;;  %v1151_v24 = vpack.c.bf16 %v571_v18, %v570_v17  ;;  %v1153_v26 = vpack.c.bf16 %v589_v20, %v588_v19  ;;  %v572_v27 = vld [vmem:[%s1736_s3 + $0x10] sm:$0xff] }
  0x43   : > { %1104 = vmatpush3.bf16.msra.mxu0 %v1103_v51  ;;  %v337_v23 = vld [vmem:[%s1500_s16] sm:$0xff]  ;;  %v340_v25 = vld [vmem:[%s1500_s16 + $0xa] sm:$0xf]  ;;  %v573_v28 = vld [vmem:[%s1736_s3 + $0x18] sm:$0xff]  ;;  %v1182_v30 = vpack.c.bf16 %v603_v22, %v602_v21 }
  0x44   : > { %1106 = vmatprep.subr.bf16.mxu0 %v1105_v54  ;;  %v342_v29 = vld [vmem:[%s1500_s16 + $0xc] sm:$0xf]  ;;  %v604_v32 = vld [vmem:[%s1736_s3 + $0x110] sm:$0xff]  ;;  %v605_v33 = vld [vmem:[%s1736_s3 + $0x118] sm:$0xff]  ;;  %v1155_v35 = vpack.c.bf16 %v573_v28, %v572_v27  ;;  %v551_v28 = vlaneseq }
  0x45   : > { %1136 = vmatpush3.bf16.msra.mxu1 %v1133_v49  ;;  %v338_v34 = vld [vmem:[%s1500_s16 + $0x8] sm:$0xf]  ;;  %v1185_v36 = vpack.c.bf16 %v605_v33, %v604_v32  ;;  %v590_v37 = vld [vmem:[%s1736_s3 + $0xa0] sm:$0xff]  ;;  %v592_v46 = vld [vmem:[%s1736_s3 + $0xb0] sm:$0xff]  ;;  %v554_v32 = vstv %s899_s17 }
  0x46   : > { %1138 = vmatprep.subr.bf16.mxu1 %v1137_v60  ;;  %v591_v38 = vld [vmem:[%s1736_s3 + $0xa8] sm:$0xff]  ;;  %v606_v39 = vld [vmem:[%s1736_s3 + $0x120] sm:$0xff]  ;;  %v593_v47 = vld [vmem:[%s1736_s3 + $0xb8] sm:$0xff] }
  0x47   : > { %1108 = vmatpush3.bf16.msra.mxu0 %v1107_v61  ;;  %v1157_v40 = vpack.c.bf16 %v591_v38, %v590_v37  ;;  %v607_v41 = vld [vmem:[%s1736_s3 + $0x128] sm:$0xff]  ;;  %v574_v42 = vld [vmem:[%s1736_s3 + $0x20] sm:$0xff]  ;;  %v608_v48 = vld [vmem:[%s1736_s3 + $0x130] sm:$0xff]  ;;  %v1161_v49 = vpack.c.bf16 %v593_v47, %v592_v46 }
  0x48   : > { %1110 = vmatprep.subr.bf16.mxu0 %v1109_v0  ;;  %v575_v43 = vld [vmem:[%s1736_s3 + $0x28] sm:$0xff]  ;;  %v1188_v44 = vpack.c.bf16 %v607_v41, %v606_v39  ;;  %v609_v50 = vld [vmem:[%s1736_s3 + $0x138] sm:$0xff]  ;;  %v576_v51 = vld [vmem:[%s1736_s3 + $0x30] sm:$0xff] }
  0x49   : > { %1140 = vmatpush3.bf16.msra.mxu1 %v1137_v60  ;;  %v1159_v45 = vpack.c.bf16 %v575_v43, %v574_v42  ;;  %v577_v52 = vld [vmem:[%s1736_s3 + $0x38] sm:$0xff]  ;;  %v1191_v53 = vpack.c.bf16 %v609_v50, %v608_v48  ;;  %v594_v55 = vld [vmem:[%s1736_s3 + $0xc0] sm:$0xff]  ;;  %v595_v56 = vld [vmem:[%s1736_s3 + $0xc8] sm:$0xff] }
  0x4a   : > { %1142 = vmatprep.subr.bf16.mxu1 %v1141_v5  ;;  %v1163_v54 = vpack.c.bf16 %v577_v52, %v576_v51  ;;  %v610_v57 = vld [vmem:[%s1736_s3 + $0x140] sm:$0xff]  ;;  %v1165_v58 = vpack.c.bf16 %v595_v56, %v594_v55  ;;  %v611_v59 = vld [vmem:[%s1736_s3 + $0x148] sm:$0xff]  ;;  %v596_v0 = vld [vmem:[%s1736_s3 + $0xd0] sm:$0xff] }
  0x4b   : > { %1112 = vmatpush3.bf16.msra.mxu0 %v1111_v6  ;;  %v578_v60 = vld [vmem:[%s1736_s3 + $0x40] sm:$0xff]  ;;  %v579_v61 = vld [vmem:[%s1736_s3 + $0x48] sm:$0xff]  ;;  %v1194_v62 = vpack.c.bf16 %v611_v59, %v610_v57  ;;  %v597_v1 = vld [vmem:[%s1736_s3 + $0xd8] sm:$0xff] }
  0x4c   : > { %1114 = vmatprep.subr.bf16.mxu0 %v1113_v9  ;;  %v1167_v63 = vpack.c.bf16 %v579_v61, %v578_v60  ;;  %v612_v2 = vld [vmem:[%s1736_s3 + $0x150] sm:$0xff]  ;;  %v1169_v3 = vpack.c.bf16 %v597_v1, %v596_v0  ;;  %v613_v4 = vld [vmem:[%s1736_s3 + $0x158] sm:$0xff]  ;;  %v598_v9 = vld [vmem:[%s1736_s3 + $0xe0] sm:$0xff] }
  0x4d   : > { %1144 = vmatpush3.bf16.msra.mxu1 %v1141_v5  ;;  %v580_v5 = vld [vmem:[%s1736_s3 + $0x50] sm:$0xff]  ;;  %v581_v6 = vld [vmem:[%s1736_s3 + $0x58] sm:$0xff]  ;;  %v1197_v7 = vpack.c.bf16 %v613_v4, %v612_v2  ;;  %v599_v10 = vld [vmem:[%s1736_s3 + $0xe8] sm:$0xff] }
  0x4e   : > { %1146 = vmatprep.subr.bf16.mxu1 %v1145_v14  ;;  %v1171_v8 = vpack.c.bf16 %v581_v6, %v580_v5  ;;  %v614_v11 = vld [vmem:[%s1736_s3 + $0x160] sm:$0xff]  ;;  %v1173_v12 = vpack.c.bf16 %v599_v10, %v598_v9  ;;  %v615_v13 = vld [vmem:[%s1736_s3 + $0x168] sm:$0xff]  ;;  %v600_v18 = vld [vmem:[%s1736_s3 + $0xf0] sm:$0xff] }
  0x4f   : > { %1116 = vmatpush3.bf16.msra.mxu0 %v1115_v15  ;;  %v583_v15 = vld [vmem:[%s1736_s3 + $0x68] sm:$0xff]  ;;  %v601_v19 = vld [vmem:[%s1736_s3 + $0xf8] sm:$0xff]  ;;  %v616_v20 = vld [vmem:[%s1736_s3 + $0x170] sm:$0xff] }
  0x50   : > { %1150 = vmatprep.subr.bf16.mxu0 %v1149_v16  ;;  %v1200_v16 = vpack.c.bf16 %v615_v13, %v614_v11  ;;  %v1177_v21 = vpack.c.bf16 %v601_v19, %v600_v18  ;;  %v617_v22 = vld [vmem:[%s1736_s3 + $0x178] sm:$0xff]  ;;  %v900_v56 = vld [vmem:[%s1737_s4] ss:$0 sm:$0xff]  ;;  %v766_v61 = vld [vmem:[%s1500_s16 + $0x8] sm:$0xff] }
  0x51   : > { %1148 = vmatpush3.bf16.msra.mxu1 %v1145_v14  ;;  %v582_v14 = vld [vmem:[%s1736_s3 + $0x60] sm:$0xff] }
  0x52   : > { %463 = vmatmul.mubr.f32.vlgmr.msra.gmra.mrb[0].mxu0 %v337_v23  ;;  %1181 = vmatprep.subr.bf16.mxu1 %v1305_v31  ;;  %v1175_v17 = vpack.c.bf16 %v583_v15, %v582_v14  ;;  %v584_v23 = vld [vmem:[%s1736_s3 + $0x70] sm:$0xff] }
  0x53   : > { %467 = vmatprep.mubr.f32.mxu0 %v340_v25  ;;  %1152 = vmatpush3.bf16.msra.mxu0 %v1151_v24  ;;  %v585_v24 = vld [vmem:[%s1736_s3 + $0x78] sm:$0xff]  ;;  %v1307_v25 = vmov 0.0  }
  0x54   : > { %1048 = vmatmul.mubr.f32.vlgmr.msra.gmra.mrb[0].mxu1 %v342_v29  ;;  %1154 = vmatprep.subr.bf16.mxu0 %v1153_v26  ;;  %v1203_v26 = vpack.c.bf16 %v617_v22, %v616_v20  ;;  %v1179_v27 = vpack.c.bf16 %v585_v24, %v584_v23  ;;  %v552_v29 = vshrl.u32 %v551_v28, 7 }
  0x55   : > { %1183 = vmatpush3.bf16.msra.mxu1 %v1182_v30  ;;  %1082 = vmatprep.mubr.msk.f32.mxu1 %vm1306_vm0, %v1307_v25 }
  0x56   : > { %468 = vmatmul.mubr.f32.gmra.mrb[2].mxu0 %v338_v34  ;;  %1184 = vmatprep.subr.bf16.mxu1 %v1305_v31  ;;  %v898_v34 = vld [vmem:[%s1735_s2] ss:$0 sm:$0xff]  ;;  %v553_v38 = vadd.s32 8, %v552_v29  ;;  %v555_v39 = vadd.s32 %v554_v32, %v552_v29 }
  0x57   : > { %1156 = vmatpush3.bf16.msra.mxu0 %v1155_v35 }
  0x58   : > { %1158 = vmatprep.subr.bf16.mxu0 %v1157_v40  ;;  %vm557_vm1 = vcmp.ge.s32.totalorder %v555_v39, 0 }
  0x59   : > { %1186 = vmatpush3.bf16.msra.mxu1 %v1185_v36 }
  0x5a   : > { %1187 = vmatprep.subr.bf16.mxu1 %v1305_v31 }
  0x5b   : > { %1160 = vmatpush3.bf16.msra.mxu0 %v1159_v45 }
  0x5c   : > { %1162 = vmatprep.subr.bf16.mxu0 %v1161_v49 }
  0x5d   : > { %1189 = vmatpush3.bf16.msra.mxu1 %v1188_v44  ;;  %v556_v44 = vadd.s32 %v554_v32, %v553_v38 }
  0x5e   : > { %1190 = vmatprep.subr.bf16.mxu1 %v1305_v31 }
  0x5f   : > { %1164 = vmatpush3.bf16.msra.mxu0 %v1163_v54  ;;  %vm558_vm2 = vcmp.ge.s32.totalorder %v556_v44, 0 }
  0x60   : > { %1166 = vmatprep.subr.bf16.mxu0 %v1165_v58 }
  0x61   : > { %1192 = vmatpush3.bf16.msra.mxu1 %v1191_v53 }
  0x62   : > { %1193 = vmatprep.subr.bf16.mxu1 %v1305_v31 }
  0x63   : > { %1168 = vmatpush3.bf16.msra.mxu0 %v1167_v63 }
  0x64   : > { %1170 = vmatprep.subr.bf16.mxu0 %v1169_v3 }
  0x65   : > { %1195 = vmatpush3.bf16.msra.mxu1 %v1194_v62 }
  0x66   : > { %1196 = vmatprep.subr.bf16.mxu1 %v1305_v31 }
  0x67   : > { %1172 = vmatpush3.bf16.msra.mxu0 %v1171_v8 }
  0x68   : > { %1174 = vmatprep.subr.bf16.mxu0 %v1173_v12 }
  0x69   : > { %1198 = vmatpush3.bf16.msra.mxu1 %v1197_v7 }
  0x6a   : > { %1199 = vmatprep.subr.bf16.mxu1 %v1305_v31 }
  0x6b   : > { %1176 = vmatpush3.bf16.msra.mxu0 %v1175_v17 }
  0x6c   : > { %1178 = vmatprep.subr.bf16.mxu0 %v1177_v21 }
  0x6d   : > { %1201 = vmatpush3.bf16.msra.mxu1 %v1200_v16 }
  0x6e   : > { %1202 = vmatprep.subr.bf16.mxu1 %v1305_v31 }
  0x6f   : > { %1180 = vmatpush3.bf16.msra.mxu0 %v1179_v27 }
  0x71   : > { %1204 = vmatpush3.bf16.msra.mxu1 %v1203_v26 }
 0x125   : > { %v939_v30 = vpop.f32.mrb[0].mxu0 }
 0x126   : > { %v940_v33 = vpop.f32.mrb[1].mxu0 }
 0x127   : > { %v941_v35 = vadd.f32 %v940_v33, %v939_v30  ;;  %v1049_v36 = vpop.f32.mrb[0].mxu1 }
 0x128   : > { %v539_v37 = vpop.f32.mrb[1].mxu1 }
 0x129   : > { %v942_v31 = vpop.f32.mrb[2].mxu0  ;;  %v465_v40 = vadd.f32 %v941_v35, %v898_v34 }
 0x12a   : > { %v943_v41 = vpop.f32.mrb[3].mxu0 }
 0x12b   : > { %v944_v42 = vadd.f32 %v943_v41, %v942_v31  ;;  %v540_v43 = vadd.f32 %v539_v37, %v465_v40 }
 0x12d   : > { %v470_v45 = vadd.f32 %v944_v42, %v898_v34  ;;  %v548_v46 = vmax.f32 %v540_v43, 0.0 }
 0x12f   : > { %v545_v47 = vadd.f32 %v1049_v36, %v470_v45  ;;  %v563_v48 = vsel %vm557_vm1, %v548_v46, 0.0 }
 0x130   : > { %565 = vst [vmem:[#allocation3] sm:$0xff] %v563_v48 }
 0x131   : > { %v549_v49 = vmax.f32 %v545_v47, 0.0 }
 0x133   : > { %v564_v50 = vsel %vm558_vm2, %v549_v49, 0.0 }
 0x134   : > { %566 = vst [vmem:[#allocation3 + $0x8] sm:$0xf] %v564_v50 }
 0x13b   : > { %v568_v51 = vld [vmem:[#allocation3 + $0x2] sm:$0xff] }
 0x13c   : > { %v569_v52 = vld [vmem:[#allocation3 + $0x4] sm:$0xff]  ;;  %689 = vmatprep.mubr.f32.mxu0 %v568_v51 }
 0x13d   : > { %1083 = vmatmul.mubr.f32.vlgmr.msra.gmra.mrb[2].mxu1 %v569_v52  ;;  %1255 = vmatmul.mubr.msk.f32.vlgmr.msra.gmra.mrb[4].mxu0 %vm557_vm1, %v548_v46 }
 0x210   : > { %v761_v53 = vpop.f32.mrb[2].mxu1  ;;  %v995_v54 = vpop.f32.mrb[4].mxu0 }
 0x211   : > { %v1084_v55 = vpop.f32.mrb[3].mxu1  ;;  %v996_v57 = vpop.f32.mrb[5].mxu0 }
 0x212   : > { %v997_v58 = vadd.f32 %v996_v57, %v995_v54 }
 0x214   : > { %v692_v59 = vadd.f32 %v997_v58, %v900_v56 }
 0x216   : > { %v762_v60 = vadd.f32 %v761_v53, %v692_v59 }
 0x218   : > { %v765_v62 = vmax.f32 %v762_v60, 0.0 }
 0x21a   : > { %v767_v63 = vadd.f32 %v766_v61, %v765_v62 }
 0x21c   : > { %v768_v0 = vmax.f32 %v767_v63, 0.0 }
 0x21e   : > { %769 = vst [vmem:[%s1383_s11] sm:$0xff] %v768_v0 }
 0x21f PF: > { %s15_s22 = sadd.s32 1, %s1302_s22   ;;  %s1739_s18 = smov %s1294_s20 }
 0x220   : > { %p12_p13 = scmp.ge.s32.totalorder %s15_s22, 6   ;;  %s1740_s19 = smov %s1298_s21 }
 0x221   : > { %s1741_s20 = smov %s1744_s23  ;;  %s1742_s21 = smov %s1748_s24 }
 0x222   :  { %14 = sbr.rel (!%p12_p13) target bundleno = 3 (0x3), region = 171 }
 0x229   :  { %797 = vsyncmov [#allocation4] }
 0x22c   :  { %s798_s11 = vpop.sfrf %797 }
 0x22d   :  { %p903_p0 = scmp.ne.s32.totalorder %s798_s11, 0 }
 0x22f   :  { %802 = shalt.err (%p903_p0)  }
 0x230   :  { %804 = vsyncmov [#allocation4 + $0x1] }
 0x233   :  { %s805_s16 = vpop.sfrf %804 }
 0x234   :  { %p904_p1 = scmp.ne.s32.totalorder %s805_s16, 0 }
 0x236   :  { %809 = shalt.err (%p904_p1)  }

</bundles_post_ra>
